<compile_context>
chip_gen: v6e
topology: v6e:2x2x1
jax: 0.10.0
libtpu: 0.0.40
codegen_flags: <defaults>
</compile_context>

<pallas_src>
import functools
import math

import jax
import jax.numpy as jnp
from jax.experimental import pallas as pl
from jax.experimental.pallas import tpu as pltpu


def _round_up(n: int, m: int) -> int:
    return ((n + m - 1) // m) * m


def _pad_gate_cols(w, h: int, hp: int):
    """Zero-pad last axis (= 4*h, PyTorch gate order i|f|g|o) to 4*hp, padding
    each gate chunk independently so gate boundaries stay lane-tile aligned."""
    if hp == h:
        return w
    lead = w.shape[:-1]
    w = w.reshape(lead + (4, h))
    w = jnp.pad(w, [(0, 0)] * len(lead) + [(0, 0), (0, hp - h)])
    return w.reshape(lead + (4 * hp,))


def _lstm_fc_chunk_kernel(x_ref, wih_ref, whh_ref, b_ref, wout_ref, bout_ref,
                          o_ref, h_ref, c_ref, xg_ref, hs_ref):
    """One (batch_tile, time_chunk) grid point:
       out[t] = Linear(LSTMCell(x[t])) for the Tc timesteps of the chunk."""
    t_chunk, block_b, dp_in = x_ref.shape
    hp = h_ref.shape[-1]

    # Fresh (h, c) at the first time chunk of every batch tile.  Correctness of
    # the carry requires the time axis (grid axis 1, "arbitrary") to iterate
    # sequentially and innermost for each batch tile.
    @pl.when(pl.program_id(1) == 0)
    def _():
        h_ref[...] = jnp.zeros_like(h_ref)
        c_ref[...] = jnp.zeros_like(c_ref)

    # ---- hoisted input projection + biases for the whole chunk --------------
    # x block is time-major (Tc, block_b, dp_in); rows of x2 are (t, b)-ordered.
    x2 = x_ref[...].reshape(t_chunk * block_b, dp_in)
    xg_ref[...] = (
        jnp.dot(x2, wih_ref[...], preferred_element_type=jnp.float32)
        + b_ref[...]                                   # b_ih + b_hh, f32, once/chunk
    )                                                  # (Tc*block_b, 4*hp) f32

    # ---- serial recurrence: only h @ W_hh + elementwise per step ------------
    # Static unroll (t_chunk is a compile-time constant); state lives in refs.
    for t in range(t_chunk):
        row = t * block_b                              # multiple of 8 (block_b % 8 == 0)
        gates = xg_ref[row:row + block_b, :] + jnp.dot(
            h_ref[...].astype(whh_ref.dtype), whh_ref[...],
            preferred_element_type=jnp.float32)        # (block_b, 4*hp) f32

        # PyTorch gate order i|f|g|o; slices are lane-tile aligned (hp % 128 == 0).
        i_g = jax.nn.sigmoid(gates[:, 0 * hp:1 * hp])
        f_g = jax.nn.sigmoid(gates[:, 1 * hp:2 * hp])
        g_g = jnp.tanh(gates[:, 2 * hp:3 * hp])
        o_g = jax.nn.sigmoid(gates[:, 3 * hp:4 * hp])

        c_new = f_g * c_ref[...] + i_g * g_g
        h_new = o_g * jnp.tanh(c_new)
        c_ref[...] = c_new
        h_ref[...] = h_new
        hs_ref[row:row + block_b, :] = h_new           # stash for deferred Linear

    # ---- deferred output projection for the whole chunk ---------------------
    out = jnp.dot(hs_ref[...].astype(wout_ref.dtype), wout_ref[...],
                  preferred_element_type=jnp.float32) + bout_ref[...]
    o_ref[...] = out.reshape(t_chunk, block_b, -1).astype(o_ref.dtype)


@functools.partial(jax.jit, static_argnames=("block_b", "t_chunk"))
def segmentation_forward(x, w_ih_t, w_hh_t, b, w_out_t, b_out, *,
                         block_b=None, t_chunk=None):
    """Forward of the PyTorch Segmentation module.

    x        : (B, T, input_dim)       batch_first, like nn.LSTM(batch_first=True)
    w_ih_t   : (input_dim, 4*hidden)   == weight_ih_l0.T  (gate order i|f|g|o)
    w_hh_t   : (hidden,   4*hidden)    == weight_hh_l0.T
    b        : (1, 4*hidden)           == bias_ih_l0 + bias_hh_l0
    w_out_t  : (hidden, output_dim)    == out_fc.weight.T
    b_out    : (1, output_dim)         == out_fc.bias
    returns  : (B, T, output_dim) float32
    """
    B, T, d_in = x.shape
    h = w_hh_t.shape[0]
    assert w_ih_t.shape == (d_in, 4 * h)
    assert b.shape == (1, 4 * h)
    d_out = w_out_t.shape[1]

    # ---- lane-dense padding: every feature dim -> multiple of 128 -----------
    dp_in = _round_up(d_in, 128)
    hp = _round_up(h, 128)
    dp_out = _round_up(d_out, 128)

    # ---- batch tile: dtype-aware sublane minimum; >=2 tiles when possible ---
    min_rows = {4: 8, 2: 16, 1: 32}.get(jnp.dtype(x.dtype).itemsize, 8)
    if block_b is None:
        rows = _round_up(B, min_rows)
        if rows > 2 * min_rows:
            # keep at least two batch tiles so the "parallel" axis can shard
            # across v7x's two TensorCores; cap at 128 rows per MXU M pass.
            block_b = min(128, _round_up(-(-rows // 2), min_rows))
        else:
            block_b = min(128, rows)
    else:
        block_b = _round_up(block_b, min_rows)
    bp = _round_up(B, block_b)

    # ---- time chunk: amortize per-grid-step overhead over Tc LSTM steps -----
    if t_chunk is None:
        t_chunk = min(16, T)
    tp = _round_up(T, t_chunk)

    # Pad batch/time/features and go time-major (single fused XLA pass on x).
    x_p = jnp.pad(x, ((0, bp - B), (0, tp - T), (0, dp_in - d_in)))
    x_tm = jnp.transpose(x_p, (1, 0, 2))               # (Tp, Bp, Dp_in)

    w_ih_p = _pad_gate_cols(jnp.pad(w_ih_t, ((0, dp_in - d_in), (0, 0))), h, hp)
    w_hh_p = _pad_gate_cols(jnp.pad(w_hh_t, ((0, hp - h), (0, 0))), h, hp)
    b_p = _pad_gate_cols(b.astype(jnp.float32), h, hp)          # biases stay f32
    w_out_p = jnp.pad(w_out_t, ((0, hp - h), (0, dp_out - d_out)))
    b_out_p = jnp.pad(b_out.astype(jnp.float32), ((0, 0), (0, dp_out - d_out)))

    grid = (bp // block_b, tp // t_chunk)

    # ---- VMEM budget (v7x-safe cap) ------------------------------------------
    f32b = 4
    x_b = jnp.dtype(x.dtype).itemsize
    w_b = jnp.dtype(w_ih_p.dtype).itemsize
    stream = 2 * t_chunk * block_b * (dp_in * x_b + dp_out * f32b)        # dbl-buffered x / out
    weights = 2 * ((dp_in + hp) * 4 * hp * w_b + hp * dp_out * w_b
                   + (4 * hp + dp_out) * f32b)                            # resident weights/biases
    scratch = (t_chunk * block_b * (4 * hp + hp) + 2 * block_b * hp) * f32b
    vmem_limit = int(min(30 << 20, max(16 << 20, stream + weights + scratch + (6 << 20))))

    out_tm = pl.pallas_call(
        _lstm_fc_chunk_kernel,
        out_shape=jax.ShapeDtypeStruct((tp, bp, dp_out), jnp.float32),
        grid_spec=pltpu.PrefetchScalarGridSpec(
            num_scalar_prefetch=0,
            grid=grid,
            in_specs=[
                pl.BlockSpec((t_chunk, block_b, dp_in), lambda bi, tc: (tc, bi, 0)),  # x chunk
                pl.BlockSpec((dp_in, 4 * hp), lambda bi, tc: (0, 0)),                 # W_ih (resident)
                pl.BlockSpec((hp, 4 * hp), lambda bi, tc: (0, 0)),                    # W_hh (resident)
                pl.BlockSpec((1, 4 * hp), lambda bi, tc: (0, 0)),                     # b (f32)
                pl.BlockSpec((hp, dp_out), lambda bi, tc: (0, 0)),                    # W_out (resident)
                pl.BlockSpec((1, dp_out), lambda bi, tc: (0, 0)),                     # b_out (f32)
            ],
            out_specs=pl.BlockSpec((t_chunk, block_b, dp_out), lambda bi, tc: (tc, bi, 0)),
            scratch_shapes=[
                pltpu.VMEM((block_b, hp), jnp.float32),                   # h state (persists over time)
                pltpu.VMEM((block_b, hp), jnp.float32),                   # c state
                pltpu.VMEM((t_chunk * block_b, 4 * hp), jnp.float32),     # chunk gate pre-activations
                pltpu.VMEM((t_chunk * block_b, hp), jnp.float32),         # chunk h stash
            ],
        ),
        compiler_params=pltpu.CompilerParams(
            # batch tiles shard across cores; the time axis is the sequential
            # recurrence and MUST stay innermost + "arbitrary".
            dimension_semantics=("parallel", "arbitrary"),
            vmem_limit_bytes=vmem_limit,
        ),
    )(x_tm, w_ih_p, w_hh_p, b_p, w_out_p, b_out_p)

    # Slice first (drops 8x dp_out padding + batch/time padding), then
    # transpose only the un-padded volume back to batch-major.
    return jnp.transpose(out_tm[:T, :B, :d_out], (1, 0, 2))


def reference_forward(x, w_ih_t, w_hh_t, b, w_out_t, b_out):
    """Pure-JAX f32 reference of LSTM(batch_first) -> Linear."""
    h_dim = w_hh_t.shape[0]
    B = x.shape[0]
    hi = jax.lax.Precision.HIGHEST

    def step(carry, x_t):
        h, c = carry
        gates = (jnp.dot(x_t, w_ih_t, precision=hi)
                 + jnp.dot(h, w_hh_t, precision=hi) + b)
        i = jax.nn.sigmoid(gates[:, 0 * h_dim:1 * h_dim])
        f = jax.nn.sigmoid(gates[:, 1 * h_dim:2 * h_dim])
        g = jnp.tanh(gates[:, 2 * h_dim:3 * h_dim])
        o = jax.nn.sigmoid(gates[:, 3 * h_dim:4 * h_dim])
        c = f * c + i * g
        h = o * jnp.tanh(c)
        return (h, c), h

    h0 = jnp.zeros((B, h_dim), jnp.float32)
    c0 = jnp.zeros((B, h_dim), jnp.float32)
    _, hs = jax.lax.scan(step, (h0, c0), jnp.swapaxes(x, 0, 1))
    hs = jnp.swapaxes(hs, 0, 1)                          # (B, T, H)
    return jnp.dot(hs, w_out_t, precision=hi) + b_out


def init_params(key, input_dim, hidden_dim, output_dim, dtype=jnp.float32):
    """Deterministic init mirroring PyTorch: LSTM params ~ U(-1/sqrt(H), 1/sqrt(H)),
    Linear ~ U(-1/sqrt(fan_in), 1/sqrt(fan_in)).  Weights stored pre-transposed to
    (in, out); the two LSTM biases are pre-summed (b_ih + b_hh)."""
    k = jax.random.split(key, 6)
    s_lstm = 1.0 / math.sqrt(hidden_dim)
    s_fc = 1.0 / math.sqrt(hidden_dim)
    w_ih_t = jax.random.uniform(k[0], (input_dim, 4 * hidden_dim), dtype, -s_lstm, s_lstm)
    w_hh_t = jax.random.uniform(k[1], (hidden_dim, 4 * hidden_dim), dtype, -s_lstm, s_lstm)
    bias = (jax.random.uniform(k[2], (1, 4 * hidden_dim), dtype, -s_lstm, s_lstm)
            + jax.random.uniform(k[3], (1, 4 * hidden_dim), dtype, -s_lstm, s_lstm))
    w_out_t = jax.random.uniform(k[4], (hidden_dim, output_dim), dtype, -s_fc, s_fc)
    b_out = jax.random.uniform(k[5], (1, output_dim), dtype, -s_fc, s_fc)
    return w_ih_t, w_hh_t, bias, w_out_t, b_out


if __name__ == "__main__":
    # Small shapes consistent with the module:
    # batch=8, seq=8, input_dim=32, hidden_dim=64, output_dim=16.
    batch, seq, input_dim, hidden_dim, output_dim = 8, 8, 32, 64, 16

    key = jax.random.PRNGKey(0)
    kx, kp = jax.random.split(key)
    x = jax.random.normal(kx, (batch, seq, input_dim), jnp.float32)
    params = init_params(kp, input_dim, hidden_dim, output_dim)
    w_ih_t, w_hh_t, bias, w_out_t, b_out = params

    out = segmentation_forward(x, *params)
    out = jax.block_until_ready(out)

    ref = reference_forward(x, *params)
    assert out.shape == (batch, seq, output_dim)
    assert jnp.allclose(out, ref, atol=1e-3, rtol=1e-3), "mismatch vs reference"

    # bf16 matmul-input fast path (v6e/v7x): bf16 x and weight matrices, but
    # biases stay f32 end-to-end; f32 accumulation + f32 state/epilogue.
    x_bf = x.astype(jnp.bfloat16)
    out_bf = segmentation_forward(
        x_bf, w_ih_t.astype(jnp.bfloat16), w_hh_t.astype(jnp.bfloat16), bias,
        w_out_t.astype(jnp.bfloat16), b_out)
    out_bf = jax.block_until_ready(out_bf)
    assert out_bf.shape == (batch, seq, output_dim)
    assert bool(jnp.all(jnp.isfinite(out_bf)))
    assert jnp.allclose(out_bf, ref, atol=1e-1, rtol=1e-1), "bf16 path diverged"

    print("KERNEL_OK")
</pallas_src>

<mosaic_0001>
module attributes {stable_mosaic.version = 11 : i64} {
  func.func @_lstm_fc_chunk_kernel(%arg0: i32, %arg1: i32, %arg2: memref<8x8x128xf32, #tpu.memory_space<vmem>>, %arg3: memref<128x512xf32, #tpu.memory_space<vmem>>, %arg4: memref<128x512xf32, #tpu.memory_space<vmem>>, %arg5: memref<1x512xf32, #tpu.memory_space<vmem>>, %arg6: memref<128x128xf32, #tpu.memory_space<vmem>>, %arg7: memref<1x128xf32, #tpu.memory_space<vmem>>, %arg8: memref<8x8x128xf32, #tpu.memory_space<vmem>>, %arg9: memref<8x128xf32, #tpu.memory_space<vmem>>, %arg10: memref<8x128xf32, #tpu.memory_space<vmem>>, %arg11: memref<64x512xf32, #tpu.memory_space<vmem>>, %arg12: memref<64x128xf32, #tpu.memory_space<vmem>>) attributes {dimension_semantics = [#tpu.dimension_semantics<parallel>, #tpu.dimension_semantics<arbitrary>], iteration_bounds = array<i64: 1, 1>, scalar_prefetch = 0 : i64, scratch_operands = 4 : i64, tpu.core_type = #tpu.core_type<tc>, window_params = [{transform_indices = @transform_0, window_bounds = array<i64: 8, 8, 128>}, {pipeline_mode = #tpu.pipeline_mode<synchronous>, transform_indices = @transform_1, window_bounds = array<i64: 128, 512>}, {pipeline_mode = #tpu.pipeline_mode<synchronous>, transform_indices = @transform_2, window_bounds = array<i64: 128, 512>}, {pipeline_mode = #tpu.pipeline_mode<synchronous>, transform_indices = @transform_3, window_bounds = array<i64: 1, 512>}, {pipeline_mode = #tpu.pipeline_mode<synchronous>, transform_indices = @transform_4, window_bounds = array<i64: 128, 128>}, {pipeline_mode = #tpu.pipeline_mode<synchronous>, transform_indices = @transform_5, window_bounds = array<i64: 1, 128>}, {transform_indices = @transform_6, window_bounds = array<i64: 8, 8, 128>}]} {
    %c0_i32 = arith.constant 0 : i32
    %0 = arith.cmpi eq, %arg1, %c0_i32 : i32
    %1 = arith.extui %0 : i1 to i32
    %c0_i32_0 = arith.constant 0 : i32
    %2 = arith.cmpi ne, %1, %c0_i32_0 : i32
    scf.if %2 {
      %cst_156 = arith.constant 0.000000e+00 : f32
      %291 = vector.broadcast %cst_156 : f32 to vector<8x128xf32>
      %c0_157 = arith.constant 0 : index
      %c0_158 = arith.constant 0 : index
      %292 = vector.load %arg9[%c0_157, %c0_158] : memref<8x128xf32, #tpu.memory_space<vmem>>, vector<8x128xf32>
      tpu.vector_store %arg9[%c0_157, %c0_158], %291 {strides = array<i32>} : memref<8x128xf32, #tpu.memory_space<vmem>>, vector<8x128xf32>,
      %cst_159 = arith.constant 0.000000e+00 : f32
      %293 = vector.broadcast %cst_159 : f32 to vector<8x128xf32>
      %c0_160 = arith.constant 0 : index
      %c0_161 = arith.constant 0 : index
      %294 = vector.load %arg10[%c0_160, %c0_161] : memref<8x128xf32, #tpu.memory_space<vmem>>, vector<8x128xf32>
      tpu.vector_store %arg10[%c0_160, %c0_161], %293 {strides = array<i32>} : memref<8x128xf32, #tpu.memory_space<vmem>>, vector<8x128xf32>,
    } else {
    }
    %c0 = arith.constant 0 : index
    %c0_1 = arith.constant 0 : index
    %c0_2 = arith.constant 0 : index
    %3 = vector.load %arg2[%c0, %c0_1, %c0_2] : memref<8x8x128xf32, #tpu.memory_space<vmem>>, vector<8x8x128xf32>
    %4 = vector.shape_cast %3 : vector<8x8x128xf32> to vector<64x128xf32>
    %c0_3 = arith.constant 0 : index
    %c0_4 = arith.constant 0 : index
    %5 = vector.load %arg3[%c0_3, %c0_4] : memref<128x512xf32, #tpu.memory_space<vmem>>, vector<128x512xf32>
    %cst = arith.constant dense<0.000000e+00> : vector<64x512xf32>
    %6 = tpu.matmul %4, %5, %cst {dimension_numbers = #tpu.dot_dimension_numbers<[1], [0], [0], [1], [0, 0, 1, 1], [], []>} : vector<64x128xf32>, vector<128x512xf32>, vector<64x512xf32> -> vector<64x512xf32>
    %c0_5 = arith.constant 0 : index
    %c0_6 = arith.constant 0 : index
    %7 = vector.load %arg5[%c0_5, %c0_6] : memref<1x512xf32, #tpu.memory_space<vmem>>, vector<1x512xf32>
    %8 = vector.broadcast %7 : vector<1x512xf32> to vector<64x512xf32>
    %9 = arith.addf %6, %8 : vector<64x512xf32>
    %c0_7 = arith.constant 0 : index
    %c0_8 = arith.constant 0 : index
    %10 = vector.load %arg11[%c0_7, %c0_8] : memref<64x512xf32, #tpu.memory_space<vmem>>, vector<64x512xf32>
    tpu.vector_store %arg11[%c0_7, %c0_8], %9 {strides = array<i32>} : memref<64x512xf32, #tpu.memory_space<vmem>>, vector<64x512xf32>,
    %c0_9 = arith.constant 0 : index
    %c0_10 = arith.constant 0 : index
    %11 = vector.load %arg11[%c0_9, %c0_10] : memref<64x512xf32, #tpu.memory_space<vmem>>, vector<8x512xf32>
    %c0_11 = arith.constant 0 : index
    %c0_12 = arith.constant 0 : index
    %12 = vector.load %arg9[%c0_11, %c0_12] : memref<8x128xf32, #tpu.memory_space<vmem>>, vector<8x128xf32>
    %c0_13 = arith.constant 0 : index
    %c0_14 = arith.constant 0 : index
    %13 = vector.load %arg4[%c0_13, %c0_14] : memref<128x512xf32, #tpu.memory_space<vmem>>, vector<128x512xf32>
    %cst_15 = arith.constant dense<0.000000e+00> : vector<8x512xf32>
    %14 = tpu.matmul %12, %13, %cst_15 {dimension_numbers = #tpu.dot_dimension_numbers<[1], [0], [0], [1], [0, 0, 1, 1], [], []>} : vector<8x128xf32>, vector<128x512xf32>, vector<8x512xf32> -> vector<8x512xf32>
    %15 = arith.addf %11, %14 : vector<8x512xf32>
    %16 = vector.extract_strided_slice %15 {offsets = [0, 0], sizes = [8, 128], strides = [1, 1]} : vector<8x512xf32> to vector<8x128xf32>
    %17 = arith.negf %16 : vector<8x128xf32>
    %18 = math.exp %17 : vector<8x128xf32>
    %cst_16 = arith.constant 1.000000e+00 : f32
    %19 = vector.broadcast %cst_16 : f32 to vector<8x128xf32>
    %20 = arith.addf %19, %18 : vector<8x128xf32>
    %21 = arith.divf %19, %20 : vector<8x128xf32>
    %22 = vector.extract_strided_slice %15 {offsets = [0, 128], sizes = [8, 128], strides = [1, 1]} : vector<8x512xf32> to vector<8x128xf32>
    %23 = arith.negf %22 : vector<8x128xf32>
    %24 = math.exp %23 : vector<8x128xf32>
    %cst_17 = arith.constant 1.000000e+00 : f32
    %25 = vector.broadcast %cst_17 : f32 to vector<8x128xf32>
    %26 = arith.addf %25, %24 : vector<8x128xf32>
    %27 = arith.divf %25, %26 : vector<8x128xf32>
    %28 = vector.extract_strided_slice %15 {offsets = [0, 256], sizes = [8, 128], strides = [1, 1]} : vector<8x512xf32> to vector<8x128xf32>
    %29 = math.tanh %28 : vector<8x128xf32>
    %30 = vector.extract_strided_slice %15 {offsets = [0, 384], sizes = [8, 128], strides = [1, 1]} : vector<8x512xf32> to vector<8x128xf32>
    %31 = arith.negf %30 : vector<8x128xf32>
    %32 = math.exp %31 : vector<8x128xf32>
    %cst_18 = arith.constant 1.000000e+00 : f32
    %33 = vector.broadcast %cst_18 : f32 to vector<8x128xf32>
    %34 = arith.addf %33, %32 : vector<8x128xf32>
    %35 = arith.divf %33, %34 : vector<8x128xf32>
    %c0_19 = arith.constant 0 : index
    %c0_20 = arith.constant 0 : index
    %36 = vector.load %arg10[%c0_19, %c0_20] : memref<8x128xf32, #tpu.memory_space<vmem>>, vector<8x128xf32>
    %37 = arith.mulf %27, %36 : vector<8x128xf32>
    %38 = arith.mulf %21, %29 : vector<8x128xf32>
    %39 = arith.addf %37, %38 : vector<8x128xf32>
    %40 = math.tanh %39 : vector<8x128xf32>
    %41 = arith.mulf %35, %40 : vector<8x128xf32>
    %c0_21 = arith.constant 0 : index
    %c0_22 = arith.constant 0 : index
    %42 = vector.load %arg10[%c0_21, %c0_22] : memref<8x128xf32, #tpu.memory_space<vmem>>, vector<8x128xf32>
    tpu.vector_store %arg10[%c0_21, %c0_22], %39 {strides = array<i32>} : memref<8x128xf32, #tpu.memory_space<vmem>>, vector<8x128xf32>,
    %c0_23 = arith.constant 0 : index
    %c0_24 = arith.constant 0 : index
    %43 = vector.load %arg9[%c0_23, %c0_24] : memref<8x128xf32, #tpu.memory_space<vmem>>, vector<8x128xf32>
    tpu.vector_store %arg9[%c0_23, %c0_24], %41 {strides = array<i32>} : memref<8x128xf32, #tpu.memory_space<vmem>>, vector<8x128xf32>,
    %c0_25 = arith.constant 0 : index
    %c0_26 = arith.constant 0 : index
    %44 = vector.load %arg12[%c0_25, %c0_26] : memref<64x128xf32, #tpu.memory_space<vmem>>, vector<8x128xf32>
    tpu.vector_store %arg12[%c0_25, %c0_26], %41 {strides = array<i32>} : memref<64x128xf32, #tpu.memory_space<vmem>>, vector<8x128xf32>,
    %c8 = arith.constant 8 : index
    %c0_27 = arith.constant 0 : index
    %45 = vector.load %arg11[%c8, %c0_27] : memref<64x512xf32, #tpu.memory_space<vmem>>, vector<8x512xf32>
    %c0_28 = arith.constant 0 : index
    %c0_29 = arith.constant 0 : index
    %46 = vector.load %arg9[%c0_28, %c0_29] : memref<8x128xf32, #tpu.memory_space<vmem>>, vector<8x128xf32>
    %c0_30 = arith.constant 0 : index
    %c0_31 = arith.constant 0 : index
    %47 = vector.load %arg4[%c0_30, %c0_31] : memref<128x512xf32, #tpu.memory_space<vmem>>, vector<128x512xf32>
    %cst_32 = arith.constant dense<0.000000e+00> : vector<8x512xf32>
    %48 = tpu.matmul %46, %47, %cst_32 {dimension_numbers = #tpu.dot_dimension_numbers<[1], [0], [0], [1], [0, 0, 1, 1], [], []>} : vector<8x128xf32>, vector<128x512xf32>, vector<8x512xf32> -> vector<8x512xf32>
    %49 = arith.addf %45, %48 : vector<8x512xf32>
    %50 = vector.extract_strided_slice %49 {offsets = [0, 0], sizes = [8, 128], strides = [1, 1]} : vector<8x512xf32> to vector<8x128xf32>
    %51 = arith.negf %50 : vector<8x128xf32>
    %52 = math.exp %51 : vector<8x128xf32>
    %cst_33 = arith.constant 1.000000e+00 : f32
    %53 = vector.broadcast %cst_33 : f32 to vector<8x128xf32>
    %54 = arith.addf %53, %52 : vector<8x128xf32>
    %55 = arith.divf %53, %54 : vector<8x128xf32>
    %56 = vector.extract_strided_slice %49 {offsets = [0, 128], sizes = [8, 128], strides = [1, 1]} : vector<8x512xf32> to vector<8x128xf32>
    %57 = arith.negf %56 : vector<8x128xf32>
    %58 = math.exp %57 : vector<8x128xf32>
    %cst_34 = arith.constant 1.000000e+00 : f32
    %59 = vector.broadcast %cst_34 : f32 to vector<8x128xf32>
    %60 = arith.addf %59, %58 : vector<8x128xf32>
    %61 = arith.divf %59, %60 : vector<8x128xf32>
    %62 = vector.extract_strided_slice %49 {offsets = [0, 256], sizes = [8, 128], strides = [1, 1]} : vector<8x512xf32> to vector<8x128xf32>
    %63 = math.tanh %62 : vector<8x128xf32>
    %64 = vector.extract_strided_slice %49 {offsets = [0, 384], sizes = [8, 128], strides = [1, 1]} : vector<8x512xf32> to vector<8x128xf32>
    %65 = arith.negf %64 : vector<8x128xf32>
    %66 = math.exp %65 : vector<8x128xf32>
    %cst_35 = arith.constant 1.000000e+00 : f32
    %67 = vector.broadcast %cst_35 : f32 to vector<8x128xf32>
    %68 = arith.addf %67, %66 : vector<8x128xf32>
    %69 = arith.divf %67, %68 : vector<8x128xf32>
    %c0_36 = arith.constant 0 : index
    %c0_37 = arith.constant 0 : index
    %70 = vector.load %arg10[%c0_36, %c0_37] : memref<8x128xf32, #tpu.memory_space<vmem>>, vector<8x128xf32>
    %71 = arith.mulf %61, %70 : vector<8x128xf32>
    %72 = arith.mulf %55, %63 : vector<8x128xf32>
    %73 = arith.addf %71, %72 : vector<8x128xf32>
    %74 = math.tanh %73 : vector<8x128xf32>
    %75 = arith.mulf %69, %74 : vector<8x128xf32>
    %c0_38 = arith.constant 0 : index
    %c0_39 = arith.constant 0 : index
    %76 = vector.load %arg10[%c0_38, %c0_39] : memref<8x128xf32, #tpu.memory_space<vmem>>, vector<8x128xf32>
    tpu.vector_store %arg10[%c0_38, %c0_39], %73 {strides = array<i32>} : memref<8x128xf32, #tpu.memory_space<vmem>>, vector<8x128xf32>,
    %c0_40 = arith.constant 0 : index
    %c0_41 = arith.constant 0 : index
    %77 = vector.load %arg9[%c0_40, %c0_41] : memref<8x128xf32, #tpu.memory_space<vmem>>, vector<8x128xf32>
    tpu.vector_store %arg9[%c0_40, %c0_41], %75 {strides = array<i32>} : memref<8x128xf32, #tpu.memory_space<vmem>>, vector<8x128xf32>,
    %c8_42 = arith.constant 8 : index
    %c0_43 = arith.constant 0 : index
    %78 = vector.load %arg12[%c8_42, %c0_43] : memref<64x128xf32, #tpu.memory_space<vmem>>, vector<8x128xf32>
    tpu.vector_store %arg12[%c8_42, %c0_43], %75 {strides = array<i32>} : memref<64x128xf32, #tpu.memory_space<vmem>>, vector<8x128xf32>,
    %c16 = arith.constant 16 : index
    %c0_44 = arith.constant 0 : index
    %79 = vector.load %arg11[%c16, %c0_44] : memref<64x512xf32, #tpu.memory_space<vmem>>, vector<8x512xf32>
    %c0_45 = arith.constant 0 : index
    %c0_46 = arith.constant 0 : index
    %80 = vector.load %arg9[%c0_45, %c0_46] : memref<8x128xf32, #tpu.memory_space<vmem>>, vector<8x128xf32>
    %c0_47 = arith.constant 0 : index
    %c0_48 = arith.constant 0 : index
    %81 = vector.load %arg4[%c0_47, %c0_48] : memref<128x512xf32, #tpu.memory_space<vmem>>, vector<128x512xf32>
    %cst_49 = arith.constant dense<0.000000e+00> : vector<8x512xf32>
    %82 = tpu.matmul %80, %81, %cst_49 {dimension_numbers = #tpu.dot_dimension_numbers<[1], [0], [0], [1], [0, 0, 1, 1], [], []>} : vector<8x128xf32>, vector<128x512xf32>, vector<8x512xf32> -> vector<8x512xf32>
    %83 = arith.addf %79, %82 : vector<8x512xf32>
    %84 = vector.extract_strided_slice %83 {offsets = [0, 0], sizes = [8, 128], strides = [1, 1]} : vector<8x512xf32> to vector<8x128xf32>
    %85 = arith.negf %84 : vector<8x128xf32>
    %86 = math.exp %85 : vector<8x128xf32>
    %cst_50 = arith.constant 1.000000e+00 : f32
    %87 = vector.broadcast %cst_50 : f32 to vector<8x128xf32>
    %88 = arith.addf %87, %86 : vector<8x128xf32>
    %89 = arith.divf %87, %88 : vector<8x128xf32>
    %90 = vector.extract_strided_slice %83 {offsets = [0, 128], sizes = [8, 128], strides = [1, 1]} : vector<8x512xf32> to vector<8x128xf32>
    %91 = arith.negf %90 : vector<8x128xf32>
    %92 = math.exp %91 : vector<8x128xf32>
    %cst_51 = arith.constant 1.000000e+00 : f32
    %93 = vector.broadcast %cst_51 : f32 to vector<8x128xf32>
    %94 = arith.addf %93, %92 : vector<8x128xf32>
    %95 = arith.divf %93, %94 : vector<8x128xf32>
    %96 = vector.extract_strided_slice %83 {offsets = [0, 256], sizes = [8, 128], strides = [1, 1]} : vector<8x512xf32> to vector<8x128xf32>
    %97 = math.tanh %96 : vector<8x128xf32>
    %98 = vector.extract_strided_slice %83 {offsets = [0, 384], sizes = [8, 128], strides = [1, 1]} : vector<8x512xf32> to vector<8x128xf32>
    %99 = arith.negf %98 : vector<8x128xf32>
    %100 = math.exp %99 : vector<8x128xf32>
    %cst_52 = arith.constant 1.000000e+00 : f32
    %101 = vector.broadcast %cst_52 : f32 to vector<8x128xf32>
    %102 = arith.addf %101, %100 : vector<8x128xf32>
    %103 = arith.divf %101, %102 : vector<8x128xf32>
    %c0_53 = arith.constant 0 : index
    %c0_54 = arith.constant 0 : index
    %104 = vector.load %arg10[%c0_53, %c0_54] : memref<8x128xf32, #tpu.memory_space<vmem>>, vector<8x128xf32>
    %105 = arith.mulf %95, %104 : vector<8x128xf32>
    %106 = arith.mulf %89, %97 : vector<8x128xf32>
    %107 = arith.addf %105, %106 : vector<8x128xf32>
    %108 = math.tanh %107 : vector<8x128xf32>
    %109 = arith.mulf %103, %108 : vector<8x128xf32>
    %c0_55 = arith.constant 0 : index
    %c0_56 = arith.constant 0 : index
    %110 = vector.load %arg10[%c0_55, %c0_56] : memref<8x128xf32, #tpu.memory_space<vmem>>, vector<8x128xf32>
    tpu.vector_store %arg10[%c0_55, %c0_56], %107 {strides = array<i32>} : memref<8x128xf32, #tpu.memory_space<vmem>>, vector<8x128xf32>,
    %c0_57 = arith.constant 0 : index
    %c0_58 = arith.constant 0 : index
    %111 = vector.load %arg9[%c0_57, %c0_58] : memref<8x128xf32, #tpu.memory_space<vmem>>, vector<8x128xf32>
    tpu.vector_store %arg9[%c0_57, %c0_58], %109 {strides = array<i32>} : memref<8x128xf32, #tpu.memory_space<vmem>>, vector<8x128xf32>,
    %c16_59 = arith.constant 16 : index
    %c0_60 = arith.constant 0 : index
    %112 = vector.load %arg12[%c16_59, %c0_60] : memref<64x128xf32, #tpu.memory_space<vmem>>, vector<8x128xf32>
    tpu.vector_store %arg12[%c16_59, %c0_60], %109 {strides = array<i32>} : memref<64x128xf32, #tpu.memory_space<vmem>>, vector<8x128xf32>,
    %c24 = arith.constant 24 : index
    %c0_61 = arith.constant 0 : index
    %113 = vector.load %arg11[%c24, %c0_61] : memref<64x512xf32, #tpu.memory_space<vmem>>, vector<8x512xf32>
    %c0_62 = arith.constant 0 : index
    %c0_63 = arith.constant 0 : index
    %114 = vector.load %arg9[%c0_62, %c0_63] : memref<8x128xf32, #tpu.memory_space<vmem>>, vector<8x128xf32>
    %c0_64 = arith.constant 0 : index
    %c0_65 = arith.constant 0 : index
    %115 = vector.load %arg4[%c0_64, %c0_65] : memref<128x512xf32, #tpu.memory_space<vmem>>, vector<128x512xf32>
    %cst_66 = arith.constant dense<0.000000e+00> : vector<8x512xf32>
    %116 = tpu.matmul %114, %115, %cst_66 {dimension_numbers = #tpu.dot_dimension_numbers<[1], [0], [0], [1], [0, 0, 1, 1], [], []>} : vector<8x128xf32>, vector<128x512xf32>, vector<8x512xf32> -> vector<8x512xf32>
    %117 = arith.addf %113, %116 : vector<8x512xf32>
    %118 = vector.extract_strided_slice %117 {offsets = [0, 0], sizes = [8, 128], strides = [1, 1]} : vector<8x512xf32> to vector<8x128xf32>
    %119 = arith.negf %118 : vector<8x128xf32>
    %120 = math.exp %119 : vector<8x128xf32>
    %cst_67 = arith.constant 1.000000e+00 : f32
    %121 = vector.broadcast %cst_67 : f32 to vector<8x128xf32>
    %122 = arith.addf %121, %120 : vector<8x128xf32>
    %123 = arith.divf %121, %122 : vector<8x128xf32>
    %124 = vector.extract_strided_slice %117 {offsets = [0, 128], sizes = [8, 128], strides = [1, 1]} : vector<8x512xf32> to vector<8x128xf32>
    %125 = arith.negf %124 : vector<8x128xf32>
    %126 = math.exp %125 : vector<8x128xf32>
    %cst_68 = arith.constant 1.000000e+00 : f32
    %127 = vector.broadcast %cst_68 : f32 to vector<8x128xf32>
    %128 = arith.addf %127, %126 : vector<8x128xf32>
    %129 = arith.divf %127, %128 : vector<8x128xf32>
    %130 = vector.extract_strided_slice %117 {offsets = [0, 256], sizes = [8, 128], strides = [1, 1]} : vector<8x512xf32> to vector<8x128xf32>
    %131 = math.tanh %130 : vector<8x128xf32>
    %132 = vector.extract_strided_slice %117 {offsets = [0, 384], sizes = [8, 128], strides = [1, 1]} : vector<8x512xf32> to vector<8x128xf32>
    %133 = arith.negf %132 : vector<8x128xf32>
    %134 = math.exp %133 : vector<8x128xf32>
    %cst_69 = arith.constant 1.000000e+00 : f32
    %135 = vector.broadcast %cst_69 : f32 to vector<8x128xf32>
    %136 = arith.addf %135, %134 : vector<8x128xf32>
    %137 = arith.divf %135, %136 : vector<8x128xf32>
    %c0_70 = arith.constant 0 : index
    %c0_71 = arith.constant 0 : index
    %138 = vector.load %arg10[%c0_70, %c0_71] : memref<8x128xf32, #tpu.memory_space<vmem>>, vector<8x128xf32>
    %139 = arith.mulf %129, %138 : vector<8x128xf32>
    %140 = arith.mulf %123, %131 : vector<8x128xf32>
    %141 = arith.addf %139, %140 : vector<8x128xf32>
    %142 = math.tanh %141 : vector<8x128xf32>
    %143 = arith.mulf %137, %142 : vector<8x128xf32>
    %c0_72 = arith.constant 0 : index
    %c0_73 = arith.constant 0 : index
    %144 = vector.load %arg10[%c0_72, %c0_73] : memref<8x128xf32, #tpu.memory_space<vmem>>, vector<8x128xf32>
    tpu.vector_store %arg10[%c0_72, %c0_73], %141 {strides = array<i32>} : memref<8x128xf32, #tpu.memory_space<vmem>>, vector<8x128xf32>,
    %c0_74 = arith.constant 0 : index
    %c0_75 = arith.constant 0 : index
    %145 = vector.load %arg9[%c0_74, %c0_75] : memref<8x128xf32, #tpu.memory_space<vmem>>, vector<8x128xf32>
    tpu.vector_store %arg9[%c0_74, %c0_75], %143 {strides = array<i32>} : memref<8x128xf32, #tpu.memory_space<vmem>>, vector<8x128xf32>,
    %c24_76 = arith.constant 24 : index
    %c0_77 = arith.constant 0 : index
    %146 = vector.load %arg12[%c24_76, %c0_77] : memref<64x128xf32, #tpu.memory_space<vmem>>, vector<8x128xf32>
    tpu.vector_store %arg12[%c24_76, %c0_77], %143 {strides = array<i32>} : memref<64x128xf32, #tpu.memory_space<vmem>>, vector<8x128xf32>,
    %c32 = arith.constant 32 : index
    %c0_78 = arith.constant 0 : index
    %147 = vector.load %arg11[%c32, %c0_78] : memref<64x512xf32, #tpu.memory_space<vmem>>, vector<8x512xf32>
    %c0_79 = arith.constant 0 : index
    %c0_80 = arith.constant 0 : index
    %148 = vector.load %arg9[%c0_79, %c0_80] : memref<8x128xf32, #tpu.memory_space<vmem>>, vector<8x128xf32>
    %c0_81 = arith.constant 0 : index
    %c0_82 = arith.constant 0 : index
    %149 = vector.load %arg4[%c0_81, %c0_82] : memref<128x512xf32, #tpu.memory_space<vmem>>, vector<128x512xf32>
    %cst_83 = arith.constant dense<0.000000e+00> : vector<8x512xf32>
    %150 = tpu.matmul %148, %149, %cst_83 {dimension_numbers = #tpu.dot_dimension_numbers<[1], [0], [0], [1], [0, 0, 1, 1], [], []>} : vector<8x128xf32>, vector<128x512xf32>, vector<8x512xf32> -> vector<8x512xf32>
    %151 = arith.addf %147, %150 : vector<8x512xf32>
    %152 = vector.extract_strided_slice %151 {offsets = [0, 0], sizes = [8, 128], strides = [1, 1]} : vector<8x512xf32> to vector<8x128xf32>
    %153 = arith.negf %152 : vector<8x128xf32>
    %154 = math.exp %153 : vector<8x128xf32>
    %cst_84 = arith.constant 1.000000e+00 : f32
    %155 = vector.broadcast %cst_84 : f32 to vector<8x128xf32>
    %156 = arith.addf %155, %154 : vector<8x128xf32>
    %157 = arith.divf %155, %156 : vector<8x128xf32>
    %158 = vector.extract_strided_slice %151 {offsets = [0, 128], sizes = [8, 128], strides = [1, 1]} : vector<8x512xf32> to vector<8x128xf32>
    %159 = arith.negf %158 : vector<8x128xf32>
    %160 = math.exp %159 : vector<8x128xf32>
    %cst_85 = arith.constant 1.000000e+00 : f32
    %161 = vector.broadcast %cst_85 : f32 to vector<8x128xf32>
    %162 = arith.addf %161, %160 : vector<8x128xf32>
    %163 = arith.divf %161, %162 : vector<8x128xf32>
    %164 = vector.extract_strided_slice %151 {offsets = [0, 256], sizes = [8, 128], strides = [1, 1]} : vector<8x512xf32> to vector<8x128xf32>
    %165 = math.tanh %164 : vector<8x128xf32>
    %166 = vector.extract_strided_slice %151 {offsets = [0, 384], sizes = [8, 128], strides = [1, 1]} : vector<8x512xf32> to vector<8x128xf32>
    %167 = arith.negf %166 : vector<8x128xf32>
    %168 = math.exp %167 : vector<8x128xf32>
    %cst_86 = arith.constant 1.000000e+00 : f32
    %169 = vector.broadcast %cst_86 : f32 to vector<8x128xf32>
    %170 = arith.addf %169, %168 : vector<8x128xf32>
    %171 = arith.divf %169, %170 : vector<8x128xf32>
    %c0_87 = arith.constant 0 : index
    %c0_88 = arith.constant 0 : index
    %172 = vector.load %arg10[%c0_87, %c0_88] : memref<8x128xf32, #tpu.memory_space<vmem>>, vector<8x128xf32>
    %173 = arith.mulf %163, %172 : vector<8x128xf32>
    %174 = arith.mulf %157, %165 : vector<8x128xf32>
    %175 = arith.addf %173, %174 : vector<8x128xf32>
    %176 = math.tanh %175 : vector<8x128xf32>
    %177 = arith.mulf %171, %176 : vector<8x128xf32>
    %c0_89 = arith.constant 0 : index
    %c0_90 = arith.constant 0 : index
    %178 = vector.load %arg10[%c0_89, %c0_90] : memref<8x128xf32, #tpu.memory_space<vmem>>, vector<8x128xf32>
    tpu.vector_store %arg10[%c0_89, %c0_90], %175 {strides = array<i32>} : memref<8x128xf32, #tpu.memory_space<vmem>>, vector<8x128xf32>,
    %c0_91 = arith.constant 0 : index
    %c0_92 = arith.constant 0 : index
    %179 = vector.load %arg9[%c0_91, %c0_92] : memref<8x128xf32, #tpu.memory_space<vmem>>, vector<8x128xf32>
    tpu.vector_store %arg9[%c0_91, %c0_92], %177 {strides = array<i32>} : memref<8x128xf32, #tpu.memory_space<vmem>>, vector<8x128xf32>,
    %c32_93 = arith.constant 32 : index
    %c0_94 = arith.constant 0 : index
    %180 = vector.load %arg12[%c32_93, %c0_94] : memref<64x128xf32, #tpu.memory_space<vmem>>, vector<8x128xf32>
    tpu.vector_store %arg12[%c32_93, %c0_94], %177 {strides = array<i32>} : memref<64x128xf32, #tpu.memory_space<vmem>>, vector<8x128xf32>,
    %c40 = arith.constant 40 : index
    %c0_95 = arith.constant 0 : index
    %181 = vector.load %arg11[%c40, %c0_95] : memref<64x512xf32, #tpu.memory_space<vmem>>, vector<8x512xf32>
    %c0_96 = arith.constant 0 : index
    %c0_97 = arith.constant 0 : index
    %182 = vector.load %arg9[%c0_96, %c0_97] : memref<8x128xf32, #tpu.memory_space<vmem>>, vector<8x128xf32>
    %c0_98 = arith.constant 0 : index
    %c0_99 = arith.constant 0 : index
    %183 = vector.load %arg4[%c0_98, %c0_99] : memref<128x512xf32, #tpu.memory_space<vmem>>, vector<128x512xf32>
    %cst_100 = arith.constant dense<0.000000e+00> : vector<8x512xf32>
    %184 = tpu.matmul %182, %183, %cst_100 {dimension_numbers = #tpu.dot_dimension_numbers<[1], [0], [0], [1], [0, 0, 1, 1], [], []>} : vector<8x128xf32>, vector<128x512xf32>, vector<8x512xf32> -> vector<8x512xf32>
    %185 = arith.addf %181, %184 : vector<8x512xf32>
    %186 = vector.extract_strided_slice %185 {offsets = [0, 0], sizes = [8, 128], strides = [1, 1]} : vector<8x512xf32> to vector<8x128xf32>
    %187 = arith.negf %186 : vector<8x128xf32>
    %188 = math.exp %187 : vector<8x128xf32>
    %cst_101 = arith.constant 1.000000e+00 : f32
    %189 = vector.broadcast %cst_101 : f32 to vector<8x128xf32>
    %190 = arith.addf %189, %188 : vector<8x128xf32>
    %191 = arith.divf %189, %190 : vector<8x128xf32>
    %192 = vector.extract_strided_slice %185 {offsets = [0, 128], sizes = [8, 128], strides = [1, 1]} : vector<8x512xf32> to vector<8x128xf32>
    %193 = arith.negf %192 : vector<8x128xf32>
    %194 = math.exp %193 : vector<8x128xf32>
    %cst_102 = arith.constant 1.000000e+00 : f32
    %195 = vector.broadcast %cst_102 : f32 to vector<8x128xf32>
    %196 = arith.addf %195, %194 : vector<8x128xf32>
    %197 = arith.divf %195, %196 : vector<8x128xf32>
    %198 = vector.extract_strided_slice %185 {offsets = [0, 256], sizes = [8, 128], strides = [1, 1]} : vector<8x512xf32> to vector<8x128xf32>
    %199 = math.tanh %198 : vector<8x128xf32>
    %200 = vector.extract_strided_slice %185 {offsets = [0, 384], sizes = [8, 128], strides = [1, 1]} : vector<8x512xf32> to vector<8x128xf32>
    %201 = arith.negf %200 : vector<8x128xf32>
    %202 = math.exp %201 : vector<8x128xf32>
    %cst_103 = arith.constant 1.000000e+00 : f32
    %203 = vector.broadcast %cst_103 : f32 to vector<8x128xf32>
    %204 = arith.addf %203, %202 : vector<8x128xf32>
    %205 = arith.divf %203, %204 : vector<8x128xf32>
    %c0_104 = arith.constant 0 : index
    %c0_105 = arith.constant 0 : index
    %206 = vector.load %arg10[%c0_104, %c0_105] : memref<8x128xf32, #tpu.memory_space<vmem>>, vector<8x128xf32>
    %207 = arith.mulf %197, %206 : vector<8x128xf32>
    %208 = arith.mulf %191, %199 : vector<8x128xf32>
    %209 = arith.addf %207, %208 : vector<8x128xf32>
    %210 = math.tanh %209 : vector<8x128xf32>
    %211 = arith.mulf %205, %210 : vector<8x128xf32>
    %c0_106 = arith.constant 0 : index
    %c0_107 = arith.constant 0 : index
    %212 = vector.load %arg10[%c0_106, %c0_107] : memref<8x128xf32, #tpu.memory_space<vmem>>, vector<8x128xf32>
    tpu.vector_store %arg10[%c0_106, %c0_107], %209 {strides = array<i32>} : memref<8x128xf32, #tpu.memory_space<vmem>>, vector<8x128xf32>,
    %c0_108 = arith.constant 0 : index
    %c0_109 = arith.constant 0 : index
    %213 = vector.load %arg9[%c0_108, %c0_109] : memref<8x128xf32, #tpu.memory_space<vmem>>, vector<8x128xf32>
    tpu.vector_store %arg9[%c0_108, %c0_109], %211 {strides = array<i32>} : memref<8x128xf32, #tpu.memory_space<vmem>>, vector<8x128xf32>,
    %c40_110 = arith.constant 40 : index
    %c0_111 = arith.constant 0 : index
    %214 = vector.load %arg12[%c40_110, %c0_111] : memref<64x128xf32, #tpu.memory_space<vmem>>, vector<8x128xf32>
    tpu.vector_store %arg12[%c40_110, %c0_111], %211 {strides = array<i32>} : memref<64x128xf32, #tpu.memory_space<vmem>>, vector<8x128xf32>,
    %c48 = arith.constant 48 : index
    %c0_112 = arith.constant 0 : index
    %215 = vector.load %arg11[%c48, %c0_112] : memref<64x512xf32, #tpu.memory_space<vmem>>, vector<8x512xf32>
    %c0_113 = arith.constant 0 : index
    %c0_114 = arith.constant 0 : index
    %216 = vector.load %arg9[%c0_113, %c0_114] : memref<8x128xf32, #tpu.memory_space<vmem>>, vector<8x128xf32>
    %c0_115 = arith.constant 0 : index
    %c0_116 = arith.constant 0 : index
    %217 = vector.load %arg4[%c0_115, %c0_116] : memref<128x512xf32, #tpu.memory_space<vmem>>, vector<128x512xf32>
    %cst_117 = arith.constant dense<0.000000e+00> : vector<8x512xf32>
    %218 = tpu.matmul %216, %217, %cst_117 {dimension_numbers = #tpu.dot_dimension_numbers<[1], [0], [0], [1], [0, 0, 1, 1], [], []>} : vector<8x128xf32>, vector<128x512xf32>, vector<8x512xf32> -> vector<8x512xf32>
    %219 = arith.addf %215, %218 : vector<8x512xf32>
    %220 = vector.extract_strided_slice %219 {offsets = [0, 0], sizes = [8, 128], strides = [1, 1]} : vector<8x512xf32> to vector<8x128xf32>
    %221 = arith.negf %220 : vector<8x128xf32>
    %222 = math.exp %221 : vector<8x128xf32>
    %cst_118 = arith.constant 1.000000e+00 : f32
    %223 = vector.broadcast %cst_118 : f32 to vector<8x128xf32>
    %224 = arith.addf %223, %222 : vector<8x128xf32>
    %225 = arith.divf %223, %224 : vector<8x128xf32>
    %226 = vector.extract_strided_slice %219 {offsets = [0, 128], sizes = [8, 128], strides = [1, 1]} : vector<8x512xf32> to vector<8x128xf32>
    %227 = arith.negf %226 : vector<8x128xf32>
    %228 = math.exp %227 : vector<8x128xf32>
    %cst_119 = arith.constant 1.000000e+00 : f32
    %229 = vector.broadcast %cst_119 : f32 to vector<8x128xf32>
    %230 = arith.addf %229, %228 : vector<8x128xf32>
    %231 = arith.divf %229, %230 : vector<8x128xf32>
    %232 = vector.extract_strided_slice %219 {offsets = [0, 256], sizes = [8, 128], strides = [1, 1]} : vector<8x512xf32> to vector<8x128xf32>
    %233 = math.tanh %232 : vector<8x128xf32>
    %234 = vector.extract_strided_slice %219 {offsets = [0, 384], sizes = [8, 128], strides = [1, 1]} : vector<8x512xf32> to vector<8x128xf32>
    %235 = arith.negf %234 : vector<8x128xf32>
    %236 = math.exp %235 : vector<8x128xf32>
    %cst_120 = arith.constant 1.000000e+00 : f32
    %237 = vector.broadcast %cst_120 : f32 to vector<8x128xf32>
    %238 = arith.addf %237, %236 : vector<8x128xf32>
    %239 = arith.divf %237, %238 : vector<8x128xf32>
    %c0_121 = arith.constant 0 : index
    %c0_122 = arith.constant 0 : index
    %240 = vector.load %arg10[%c0_121, %c0_122] : memref<8x128xf32, #tpu.memory_space<vmem>>, vector<8x128xf32>
    %241 = arith.mulf %231, %240 : vector<8x128xf32>
    %242 = arith.mulf %225, %233 : vector<8x128xf32>
    %243 = arith.addf %241, %242 : vector<8x128xf32>
    %244 = math.tanh %243 : vector<8x128xf32>
    %245 = arith.mulf %239, %244 : vector<8x128xf32>
    %c0_123 = arith.constant 0 : index
    %c0_124 = arith.constant 0 : index
    %246 = vector.load %arg10[%c0_123, %c0_124] : memref<8x128xf32, #tpu.memory_space<vmem>>, vector<8x128xf32>
    tpu.vector_store %arg10[%c0_123, %c0_124], %243 {strides = array<i32>} : memref<8x128xf32, #tpu.memory_space<vmem>>, vector<8x128xf32>,
    %c0_125 = arith.constant 0 : index
    %c0_126 = arith.constant 0 : index
    %247 = vector.load %arg9[%c0_125, %c0_126] : memref<8x128xf32, #tpu.memory_space<vmem>>, vector<8x128xf32>
    tpu.vector_store %arg9[%c0_125, %c0_126], %245 {strides = array<i32>} : memref<8x128xf32, #tpu.memory_space<vmem>>, vector<8x128xf32>,
    %c48_127 = arith.constant 48 : index
    %c0_128 = arith.constant 0 : index
    %248 = vector.load %arg12[%c48_127, %c0_128] : memref<64x128xf32, #tpu.memory_space<vmem>>, vector<8x128xf32>
    tpu.vector_store %arg12[%c48_127, %c0_128], %245 {strides = array<i32>} : memref<64x128xf32, #tpu.memory_space<vmem>>, vector<8x128xf32>,
    %c56 = arith.constant 56 : index
    %c0_129 = arith.constant 0 : index
    %249 = vector.load %arg11[%c56, %c0_129] : memref<64x512xf32, #tpu.memory_space<vmem>>, vector<8x512xf32>
    %c0_130 = arith.constant 0 : index
    %c0_131 = arith.constant 0 : index
    %250 = vector.load %arg9[%c0_130, %c0_131] : memref<8x128xf32, #tpu.memory_space<vmem>>, vector<8x128xf32>
    %c0_132 = arith.constant 0 : index
    %c0_133 = arith.constant 0 : index
    %251 = vector.load %arg4[%c0_132, %c0_133] : memref<128x512xf32, #tpu.memory_space<vmem>>, vector<128x512xf32>
    %cst_134 = arith.constant dense<0.000000e+00> : vector<8x512xf32>
    %252 = tpu.matmul %250, %251, %cst_134 {dimension_numbers = #tpu.dot_dimension_numbers<[1], [0], [0], [1], [0, 0, 1, 1], [], []>} : vector<8x128xf32>, vector<128x512xf32>, vector<8x512xf32> -> vector<8x512xf32>
    %253 = arith.addf %249, %252 : vector<8x512xf32>
    %254 = vector.extract_strided_slice %253 {offsets = [0, 0], sizes = [8, 128], strides = [1, 1]} : vector<8x512xf32> to vector<8x128xf32>
    %255 = arith.negf %254 : vector<8x128xf32>
    %256 = math.exp %255 : vector<8x128xf32>
    %cst_135 = arith.constant 1.000000e+00 : f32
    %257 = vector.broadcast %cst_135 : f32 to vector<8x128xf32>
    %258 = arith.addf %257, %256 : vector<8x128xf32>
    %259 = arith.divf %257, %258 : vector<8x128xf32>
    %260 = vector.extract_strided_slice %253 {offsets = [0, 128], sizes = [8, 128], strides = [1, 1]} : vector<8x512xf32> to vector<8x128xf32>
    %261 = arith.negf %260 : vector<8x128xf32>
    %262 = math.exp %261 : vector<8x128xf32>
    %cst_136 = arith.constant 1.000000e+00 : f32
    %263 = vector.broadcast %cst_136 : f32 to vector<8x128xf32>
    %264 = arith.addf %263, %262 : vector<8x128xf32>
    %265 = arith.divf %263, %264 : vector<8x128xf32>
    %266 = vector.extract_strided_slice %253 {offsets = [0, 256], sizes = [8, 128], strides = [1, 1]} : vector<8x512xf32> to vector<8x128xf32>
    %267 = math.tanh %266 : vector<8x128xf32>
    %268 = vector.extract_strided_slice %253 {offsets = [0, 384], sizes = [8, 128], strides = [1, 1]} : vector<8x512xf32> to vector<8x128xf32>
    %269 = arith.negf %268 : vector<8x128xf32>
    %270 = math.exp %269 : vector<8x128xf32>
    %cst_137 = arith.constant 1.000000e+00 : f32
    %271 = vector.broadcast %cst_137 : f32 to vector<8x128xf32>
    %272 = arith.addf %271, %270 : vector<8x128xf32>
    %273 = arith.divf %271, %272 : vector<8x128xf32>
    %c0_138 = arith.constant 0 : index
    %c0_139 = arith.constant 0 : index
    %274 = vector.load %arg10[%c0_138, %c0_139] : memref<8x128xf32, #tpu.memory_space<vmem>>, vector<8x128xf32>
    %275 = arith.mulf %265, %274 : vector<8x128xf32>
    %276 = arith.mulf %259, %267 : vector<8x128xf32>
    %277 = arith.addf %275, %276 : vector<8x128xf32>
    %278 = math.tanh %277 : vector<8x128xf32>
    %279 = arith.mulf %273, %278 : vector<8x128xf32>
    %c0_140 = arith.constant 0 : index
    %c0_141 = arith.constant 0 : index
    %280 = vector.load %arg10[%c0_140, %c0_141] : memref<8x128xf32, #tpu.memory_space<vmem>>, vector<8x128xf32>
    tpu.vector_store %arg10[%c0_140, %c0_141], %277 {strides = array<i32>} : memref<8x128xf32, #tpu.memory_space<vmem>>, vector<8x128xf32>,
    %c0_142 = arith.constant 0 : index
    %c0_143 = arith.constant 0 : index
    %281 = vector.load %arg9[%c0_142, %c0_143] : memref<8x128xf32, #tpu.memory_space<vmem>>, vector<8x128xf32>
    tpu.vector_store %arg9[%c0_142, %c0_143], %279 {strides = array<i32>} : memref<8x128xf32, #tpu.memory_space<vmem>>, vector<8x128xf32>,
    %c56_144 = arith.constant 56 : index
    %c0_145 = arith.constant 0 : index
    %282 = vector.load %arg12[%c56_144, %c0_145] : memref<64x128xf32, #tpu.memory_space<vmem>>, vector<8x128xf32>
    tpu.vector_store %arg12[%c56_144, %c0_145], %279 {strides = array<i32>} : memref<64x128xf32, #tpu.memory_space<vmem>>, vector<8x128xf32>,
    %c0_146 = arith.constant 0 : index
    %c0_147 = arith.constant 0 : index
    %283 = vector.load %arg12[%c0_146, %c0_147] : memref<64x128xf32, #tpu.memory_space<vmem>>, vector<64x128xf32>
    %c0_148 = arith.constant 0 : index
    %c0_149 = arith.constant 0 : index
    %284 = vector.load %arg6[%c0_148, %c0_149] : memref<128x128xf32, #tpu.memory_space<vmem>>, vector<128x128xf32>
    %cst_150 = arith.constant dense<0.000000e+00> : vector<64x128xf32>
    %285 = tpu.matmul %283, %284, %cst_150 {dimension_numbers = #tpu.dot_dimension_numbers<[1], [0], [0], [1], [0, 0, 1, 1], [], []>} : vector<64x128xf32>, vector<128x128xf32>, vector<64x128xf32> -> vector<64x128xf32>
    %c0_151 = arith.constant 0 : index
    %c0_152 = arith.constant 0 : index
    %286 = vector.load %arg7[%c0_151, %c0_152] : memref<1x128xf32, #tpu.memory_space<vmem>>, vector<1x128xf32>
    %287 = vector.broadcast %286 : vector<1x128xf32> to vector<64x128xf32>
    %288 = arith.addf %285, %287 : vector<64x128xf32>
    %289 = vector.shape_cast %288 : vector<64x128xf32> to vector<8x8x128xf32>
    %c0_153 = arith.constant 0 : index
    %c0_154 = arith.constant 0 : index
    %c0_155 = arith.constant 0 : index
    %290 = vector.load %arg8[%c0_153, %c0_154, %c0_155] : memref<8x8x128xf32, #tpu.memory_space<vmem>>, vector<8x8x128xf32>
    tpu.vector_store %arg8[%c0_153, %c0_154, %c0_155], %289 {strides = array<i32>} : memref<8x8x128xf32, #tpu.memory_space<vmem>>, vector<8x8x128xf32>,
    return
  }
  func.func @transform_0(%arg0: i32, %arg1: i32) -> (i32, i32, i32) {
    %c0_i32 = arith.constant 0 : i32
    %c0_i32_0 = arith.constant 0 : i32
    return %arg1, %arg0, %c0_i32 : i32, i32, i32
  }
  func.func @transform_1(%arg0: i32, %arg1: i32) -> (i32, i32) {
    %c0_i32 = arith.constant 0 : i32
    %c0_i32_0 = arith.constant 0 : i32
    %c0_i32_1 = arith.constant 0 : i32
    return %c0_i32, %c0_i32_0 : i32, i32
  }
  func.func @transform_2(%arg0: i32, %arg1: i32) -> (i32, i32) {
    %c0_i32 = arith.constant 0 : i32
    %c0_i32_0 = arith.constant 0 : i32
    %c0_i32_1 = arith.constant 0 : i32
    return %c0_i32, %c0_i32_0 : i32, i32
  }
  func.func @transform_3(%arg0: i32, %arg1: i32) -> (i32, i32) {
    %c0_i32 = arith.constant 0 : i32
    %c0_i32_0 = arith.constant 0 : i32
    %c0_i32_1 = arith.constant 0 : i32
    return %c0_i32, %c0_i32_0 : i32, i32
  }
  func.func @transform_4(%arg0: i32, %arg1: i32) -> (i32, i32) {
    %c0_i32 = arith.constant 0 : i32
    %c0_i32_0 = arith.constant 0 : i32
    %c0_i32_1 = arith.constant 0 : i32
    return %c0_i32, %c0_i32_0 : i32, i32
  }
  func.func @transform_5(%arg0: i32, %arg1: i32) -> (i32, i32) {
    %c0_i32 = arith.constant 0 : i32
    %c0_i32_0 = arith.constant 0 : i32
    %c0_i32_1 = arith.constant 0 : i32
    return %c0_i32, %c0_i32_0 : i32, i32
  }
  func.func @transform_6(%arg0: i32, %arg1: i32) -> (i32, i32, i32) {
    %c0_i32 = arith.constant 0 : i32
    %c0_i32_0 = arith.constant 0 : i32
    return %arg1, %arg0, %c0_i32 : i32, i32, i32
  }
}

</mosaic_0001>

<bundles_post_ra>
// kernel: segmentation_forward.1
= control target key start
LH: loop header
LB: loop body
LE: loop exit
PB: predicated region body
PF: predicated region fallthrough
CT: control target
= control target key end

     0   :  { %v4596_v3 = vmov 0.0   ;;  %s4589_s1 = inlined_call_operand.vmem [shape: f32[128,512], index: 1, kind: input, shape index: {}]   ;;  %s4590_s2 = inlined_call_operand.vmem [shape: f32[128,512], index: 2, kind: input, shape index: {}]   ;;  %s4591_s0 = inlined_call_operand.vmem [shape: f32[8,8,128], index: 0, kind: input, shape index: {}]   ;;  %s4592_s3 = inlined_call_operand.vmem [shape: f32[1,512], index: 3, kind: input, shape index: {}]   ;;  %s4593_s4 = inlined_call_operand.vmem [shape: f32[128,128], index: 4, kind: input, shape index: {}]   ;;  %s4594_s5 = inlined_call_operand.vmem [shape: f32[1,128], index: 5, kind: input, shape index: {}]   ;;  %s4595_s6 = inlined_call_operand.vmem [shape: f32[8,8,128], index: 6, kind: output, shape index: {}]  }
   0x1   :  { %v98_v0 = vld [vmem:[%s4589_s1 + $0x1e8] sm:$0xff]  ;;  %v97_v1 = vld [vmem:[%s4589_s1 + $0x1e0] sm:$0xff]  ;;  %187 = vmatprep.mubr.f32.mxu1 %v4596_v3  ;;  %514 = vmatprep.mubr.f32.mxu0 %v4596_v3 }
   0x2   :  { %v94_v2 = vld [vmem:[%s4589_s1 + $0x1c8] sm:$0xff]  ;;  %123 = vmatprep.subr.mxu1 %v98_v0  ;;  %v93_v5 = vld [vmem:[%s4589_s1 + $0x1c0] sm:$0xff] }
   0x3   :  { %v2745_v4 = vld [vmem:[%s4590_s2 + $0x1e8] sm:$0xff]  ;;  %v2753_v6 = vld [vmem:[%s4590_s2 + $0x1e0] sm:$0xff]  ;;  %124 = vmatpush1.msra.mxu1 %v97_v1  ;;  %v100_v1 = vld [vmem:[%s4589_s1 + $0x1f8] sm:$0xff] }
   0x4   :  { %450 = vmatprep.subr.mxu0 %v2745_v4  ;;  %v90_v7 = vld [vmem:[%s4589_s1 + $0x1a8] sm:$0xff]  ;;  %125 = vmatprep.subr.mxu1 %v94_v2  ;;  %v89_v9 = vld [vmem:[%s4589_s1 + $0x1a0] sm:$0xff]  ;;  %v99_v2 = vld [vmem:[%s4589_s1 + $0x1f0] sm:$0xff] }
   0x5   :  { %v2762_v8 = vld [vmem:[%s4590_s2 + $0x1c8] sm:$0xff]  ;;  %451 = vmatpush1.msra.mxu0 %v2753_v6  ;;  %v2771_v10 = vld [vmem:[%s4590_s2 + $0x1c0] sm:$0xff]  ;;  %126 = vmatpush1.msra.mxu1 %v93_v5 }
   0x6   :  { %v2776_v11 = vld [vmem:[%s4590_s2 + $0x1a8] sm:$0xff]  ;;  %452 = vmatprep.subr.mxu0 %v2762_v8  ;;  %v2785_v13 = vld [vmem:[%s4590_s2 + $0x1a0] sm:$0xff]  ;;  %127 = vmatprep.subr.mxu1 %v90_v7  ;;  %v96_v7 = vld [vmem:[%s4589_s1 + $0x1d8] sm:$0xff] }
   0x7   :  { %v86_v12 = vld [vmem:[%s4589_s1 + $0x188] sm:$0xff]  ;;  %453 = vmatpush1.msra.mxu0 %v2771_v10  ;;  %v85_v14 = vld [vmem:[%s4589_s1 + $0x180] sm:$0xff]  ;;  %128 = vmatpush1.msra.mxu1 %v89_v9  ;;  %v95_v9 = vld [vmem:[%s4589_s1 + $0x1d0] sm:$0xff] }
   0x8   :  { %v2794_v15 = vld [vmem:[%s4590_s2 + $0x188] sm:$0xff]  ;;  %454 = vmatprep.subr.mxu0 %v2776_v11  ;;  %v2803_v17 = vld [vmem:[%s4590_s2 + $0x180] sm:$0xff]  ;;  %129 = vmatprep.subr.mxu1 %v86_v12 }
   0x9   :  { %v82_v16 = vld [vmem:[%s4589_s1 + $0x168] sm:$0xff]  ;;  %455 = vmatpush1.msra.mxu0 %v2785_v13  ;;  %v81_v18 = vld [vmem:[%s4589_s1 + $0x160] sm:$0xff]  ;;  %130 = vmatpush1.msra.mxu1 %v85_v14  ;;  %v92_v14 = vld [vmem:[%s4589_s1 + $0x1b8] sm:$0xff] }
   0xa   :  { %v2812_v19 = vld [vmem:[%s4590_s2 + $0x168] sm:$0xff]  ;;  %456 = vmatprep.subr.mxu0 %v2794_v15  ;;  %v2821_v21 = vld [vmem:[%s4590_s2 + $0x160] sm:$0xff]  ;;  %131 = vmatprep.subr.mxu1 %v82_v16  ;;  %v91_v16 = vld [vmem:[%s4589_s1 + $0x1b0] sm:$0xff] }
   0xb   :  { %v78_v20 = vld [vmem:[%s4589_s1 + $0x148] sm:$0xff]  ;;  %457 = vmatpush1.msra.mxu0 %v2803_v17  ;;  %v77_v22 = vld [vmem:[%s4589_s1 + $0x140] sm:$0xff]  ;;  %132 = vmatpush1.msra.mxu1 %v81_v18  ;;  %v88_v18 = vld [vmem:[%s4589_s1 + $0x198] sm:$0xff] }
   0xc   :  { %v2830_v23 = vld [vmem:[%s4590_s2 + $0x148] sm:$0xff]  ;;  %458 = vmatprep.subr.mxu0 %v2812_v19  ;;  %v2839_v25 = vld [vmem:[%s4590_s2 + $0x140] sm:$0xff]  ;;  %133 = vmatprep.subr.mxu1 %v78_v20  ;;  %v87_v20 = vld [vmem:[%s4589_s1 + $0x190] sm:$0xff] }
   0xd   :  { %v74_v24 = vld [vmem:[%s4589_s1 + $0x128] sm:$0xff]  ;;  %459 = vmatpush1.msra.mxu0 %v2821_v21  ;;  %v73_v26 = vld [vmem:[%s4589_s1 + $0x120] sm:$0xff]  ;;  %134 = vmatpush1.msra.mxu1 %v77_v22  ;;  %v3063_v22 = vld [vmem:[%s4591_s0 + $0x10] sm:$0xff] }
   0xe   :  { %v2848_v27 = vld [vmem:[%s4590_s2 + $0x128] sm:$0xff]  ;;  %460 = vmatprep.subr.mxu0 %v2830_v23  ;;  %v2857_v29 = vld [vmem:[%s4590_s2 + $0x120] sm:$0xff]  ;;  %135 = vmatprep.subr.mxu1 %v74_v24  ;;  %v84_v24 = vld [vmem:[%s4589_s1 + $0x178] sm:$0xff] }
   0xf   :  { %v70_v28 = vld [vmem:[%s4589_s1 + $0x108] sm:$0xff]  ;;  %461 = vmatpush1.msra.mxu0 %v2839_v25  ;;  %v69_v30 = vld [vmem:[%s4589_s1 + $0x100] sm:$0xff]  ;;  %136 = vmatpush1.msra.mxu1 %v73_v26  ;;  %v83_v26 = vld [vmem:[%s4589_s1 + $0x170] sm:$0xff] }
  0x10   :  { %v2866_v31 = vld [vmem:[%s4590_s2 + $0x108] sm:$0xff]  ;;  %462 = vmatprep.subr.mxu0 %v2848_v27  ;;  %v2875_v33 = vld [vmem:[%s4590_s2 + $0x100] sm:$0xff]  ;;  %137 = vmatprep.subr.mxu1 %v70_v28  ;;  %v80_v28 = vld [vmem:[%s4589_s1 + $0x158] sm:$0xff] }
  0x11   :  { %v66_v32 = vld [vmem:[%s4589_s1 + $0xe8] sm:$0xff]  ;;  %463 = vmatpush1.msra.mxu0 %v2857_v29  ;;  %v65_v34 = vld [vmem:[%s4589_s1 + $0xe0] sm:$0xff]  ;;  %138 = vmatpush1.msra.mxu1 %v69_v30  ;;  %v79_v30 = vld [vmem:[%s4589_s1 + $0x150] sm:$0xff] }
  0x12   :  { %v2884_v35 = vld [vmem:[%s4590_s2 + $0xe8] sm:$0xff]  ;;  %464 = vmatprep.subr.mxu0 %v2866_v31  ;;  %v2893_v37 = vld [vmem:[%s4590_s2 + $0xe0] sm:$0xff]  ;;  %139 = vmatprep.subr.mxu1 %v66_v32  ;;  %v76_v32 = vld [vmem:[%s4589_s1 + $0x138] sm:$0xff] }
  0x13   :  { %v62_v36 = vld [vmem:[%s4589_s1 + $0xc8] sm:$0xff]  ;;  %465 = vmatpush1.msra.mxu0 %v2875_v33  ;;  %v61_v38 = vld [vmem:[%s4589_s1 + $0xc0] sm:$0xff]  ;;  %140 = vmatpush1.msra.mxu1 %v65_v34  ;;  %v72_v34 = vld [vmem:[%s4589_s1 + $0x118] sm:$0xff] }
  0x14   :  { %v2902_v39 = vld [vmem:[%s4590_s2 + $0xc8] sm:$0xff]  ;;  %466 = vmatprep.subr.mxu0 %v2884_v35  ;;  %v2911_v41 = vld [vmem:[%s4590_s2 + $0xc0] sm:$0xff]  ;;  %141 = vmatprep.subr.mxu1 %v62_v36  ;;  %v71_v36 = vld [vmem:[%s4589_s1 + $0x110] sm:$0xff] }
  0x15   :  { %v58_v40 = vld [vmem:[%s4589_s1 + $0xa8] sm:$0xff]  ;;  %467 = vmatpush1.msra.mxu0 %v2893_v37  ;;  %v57_v42 = vld [vmem:[%s4589_s1 + $0xa0] sm:$0xff]  ;;  %142 = vmatpush1.msra.mxu1 %v61_v38  ;;  %v68_v38 = vld [vmem:[%s4589_s1 + $0xf8] sm:$0xff] }
  0x16   :  { %v2920_v43 = vld [vmem:[%s4590_s2 + $0xa8] sm:$0xff]  ;;  %468 = vmatprep.subr.mxu0 %v2902_v39  ;;  %v2929_v45 = vld [vmem:[%s4590_s2 + $0xa0] sm:$0xff]  ;;  %143 = vmatprep.subr.mxu1 %v58_v40  ;;  %v64_v40 = vld [vmem:[%s4589_s1 + $0xd8] sm:$0xff] }
  0x17   :  { %v54_v44 = vld [vmem:[%s4589_s1 + $0x88] sm:$0xff]  ;;  %469 = vmatpush1.msra.mxu0 %v2911_v41  ;;  %v53_v46 = vld [vmem:[%s4589_s1 + $0x80] sm:$0xff]  ;;  %144 = vmatpush1.msra.mxu1 %v57_v42  ;;  %v63_v42 = vld [vmem:[%s4589_s1 + $0xd0] sm:$0xff] }
  0x18   :  { %v2938_v47 = vld [vmem:[%s4590_s2 + $0x88] sm:$0xff]  ;;  %470 = vmatprep.subr.mxu0 %v2920_v43  ;;  %v2947_v49 = vld [vmem:[%s4590_s2 + $0x80] sm:$0xff]  ;;  %145 = vmatprep.subr.mxu1 %v54_v44  ;;  %v60_v44 = vld [vmem:[%s4589_s1 + $0xb8] sm:$0xff] }
  0x19   :  { %v50_v48 = vld [vmem:[%s4589_s1 + $0x68] sm:$0xff]  ;;  %471 = vmatpush1.msra.mxu0 %v2929_v45  ;;  %v49_v50 = vld [vmem:[%s4589_s1 + $0x60] sm:$0xff]  ;;  %146 = vmatpush1.msra.mxu1 %v53_v46  ;;  %v56_v46 = vld [vmem:[%s4589_s1 + $0x98] sm:$0xff] }
  0x1a   :  { %v2956_v51 = vld [vmem:[%s4590_s2 + $0x68] sm:$0xff]  ;;  %472 = vmatprep.subr.mxu0 %v2938_v47  ;;  %v2965_v53 = vld [vmem:[%s4590_s2 + $0x60] sm:$0xff]  ;;  %147 = vmatprep.subr.mxu1 %v50_v48  ;;  %v55_v48 = vld [vmem:[%s4589_s1 + $0x90] sm:$0xff] }
  0x1b   :  { %v46_v52 = vld [vmem:[%s4589_s1 + $0x48] sm:$0xff]  ;;  %473 = vmatpush1.msra.mxu0 %v2947_v49  ;;  %v45_v54 = vld [vmem:[%s4589_s1 + $0x40] sm:$0xff]  ;;  %148 = vmatpush1.msra.mxu1 %v49_v50  ;;  %v52_v50 = vld [vmem:[%s4589_s1 + $0x78] sm:$0xff] }
  0x1c   :  { %v2974_v55 = vld [vmem:[%s4590_s2 + $0x48] sm:$0xff]  ;;  %474 = vmatprep.subr.mxu0 %v2956_v51  ;;  %v2983_v57 = vld [vmem:[%s4590_s2 + $0x40] sm:$0xff]  ;;  %149 = vmatprep.subr.mxu1 %v46_v52  ;;  %v48_v52 = vld [vmem:[%s4589_s1 + $0x58] sm:$0xff] }
  0x1d   :  { %v42_v56 = vld [vmem:[%s4589_s1 + $0x28] sm:$0xff]  ;;  %475 = vmatpush1.msra.mxu0 %v2965_v53  ;;  %v41_v58 = vld [vmem:[%s4589_s1 + $0x20] sm:$0xff]  ;;  %150 = vmatpush1.msra.mxu1 %v45_v54  ;;  %v47_v54 = vld [vmem:[%s4589_s1 + $0x50] sm:$0xff] }
  0x1e   :  { %v2992_v59 = vld [vmem:[%s4590_s2 + $0x28] sm:$0xff]  ;;  %476 = vmatprep.subr.mxu0 %v2974_v55  ;;  %v3001_v61 = vld [vmem:[%s4590_s2 + $0x20] sm:$0xff]  ;;  %151 = vmatprep.subr.mxu1 %v42_v56  ;;  %v44_v56 = vld [vmem:[%s4589_s1 + $0x38] sm:$0xff] }
  0x1f   :  { %v38_v60 = vld [vmem:[%s4589_s1 + $0x8] sm:$0xff]  ;;  %477 = vmatpush1.msra.mxu0 %v2983_v57  ;;  %v37_v62 = vld [vmem:[%s4589_s1] sm:$0xff]  ;;  %152 = vmatpush1.msra.mxu1 %v41_v58  ;;  %v40_v58 = vld [vmem:[%s4589_s1 + $0x18] sm:$0xff] }
  0x20   :  { %v3010_v63 = vld [vmem:[%s4590_s2 + $0x8] sm:$0xff]  ;;  %478 = vmatprep.subr.mxu0 %v2992_v59  ;;  %v3016_v0 = vld [vmem:[%s4591_s0] sm:$0xff]  ;;  %153 = vmatprep.subr.mxu1 %v38_v60  ;;  %v39_v60 = vld [vmem:[%s4589_s1 + $0x10] sm:$0xff] }
  0x21   :  { %479 = vmatpush1.msra.mxu0 %v3001_v61  ;;  %v3028_v5 = vld [vmem:[%s4590_s2] sm:$0xff]  ;;  %154 = vmatpush1.msra.mxu1 %v37_v62  ;;  %v3042_v12 = vld [vmem:[%s4591_s0 + $0x8] sm:$0xff]  ;;  %v3200_v62 = vld [vmem:[%s4590_s2 + $0x1d8] sm:$0xff] }
  0x22   :  { %480 = vmatprep.subr.mxu0 %v3010_v63  ;;  %188 = vmatmul.mubr.f32.vlgmr.msra.gmra.mxu1 %v3016_v0 }
  0x23   :  { %236 = vmatprep.subr.mxu1 %v100_v1  ;;  %481 = vmatpush1.msra.mxu0 %v3028_v5  ;;  %v3208_v1 = vld [vmem:[%s4590_s2 + $0x1d0] sm:$0xff] }
  0x24   :  { %237 = vmatpush1.msra.mxu1 %v99_v2  ;;  %515 = vmatmul.mubr.f32.vlgmr.msra.gmra.mxu0 %v4596_v3  ;;  %v3236_v2 = vld [vmem:[%s4590_s2 + $0x190] sm:$0xff] }
  0x25   :  { %238 = vmatprep.subr.mxu1 %v96_v7  ;;  %193 = vmatprep.mubr.f32.mxu1 %v4596_v3  ;;  %v3256_v7 = vld [vmem:[%s4590_s2 + $0x158] sm:$0xff] }
  0x26   :  { %239 = vmatpush1.msra.mxu1 %v95_v9  ;;  %693 = vmatprep.subr.mxu0 %v2745_v4  ;;  %v3084_v4 = vld [vmem:[%s4591_s0 + $0x18] sm:$0xff]  ;;  %v3264_v9 = vld [vmem:[%s4590_s2 + $0x150] sm:$0xff] }
  0x27   :  { %194 = vmatmul.mubr.f32.gmra.mxu1 %v3042_v12  ;;  %240 = vmatprep.subr.mxu1 %v92_v14  ;;  %v3292_v14 = vld [vmem:[%s4590_s2 + $0x110] sm:$0xff] }
  0x28   :  { %241 = vmatpush1.msra.mxu1 %v91_v16  ;;  %199 = vmatprep.mubr.f32.mxu1 %v4596_v3  ;;  %v3312_v16 = vld [vmem:[%s4590_s2 + $0xd8] sm:$0xff] }
  0x29   :  { %242 = vmatprep.subr.mxu1 %v88_v18  ;;  %694 = vmatpush1.msra.mxu0 %v2753_v6  ;;  %v75_v6 = vld [vmem:[%s4589_s1 + $0x130] sm:$0xff] }
  0x2a   :  { %243 = vmatpush1.msra.mxu1 %v87_v20  ;;  %695 = vmatprep.subr.mxu0 %v2762_v8  ;;  %v3105_v8 = vld [vmem:[%s4591_s0 + $0x20] sm:$0xff]  ;;  %v3320_v18 = vld [vmem:[%s4590_s2 + $0xd0] sm:$0xff]  ;;  %v3340_v20 = vld [vmem:[%s4590_s2 + $0x98] sm:$0xff] }
  0x2b   :  { %200 = vmatmul.mubr.f32.gmra.mxu1 %v3063_v22  ;;  %244 = vmatprep.subr.mxu1 %v84_v24  ;;  %v3368_v24 = vld [vmem:[%s4590_s2 + $0x58] sm:$0xff] }
  0x2c   :  { %245 = vmatpush1.msra.mxu1 %v83_v26  ;;  %205 = vmatprep.mubr.f32.mxu1 %v4596_v3  ;;  %v3376_v26 = vld [vmem:[%s4590_s2 + $0x50] sm:$0xff] }
  0x2d   :  { %246 = vmatprep.subr.mxu1 %v80_v28  ;;  %696 = vmatpush1.msra.mxu0 %v2771_v10  ;;  %v67_v10 = vld [vmem:[%s4589_s1 + $0xf0] sm:$0xff]  ;;  %v3396_v28 = vld [vmem:[%s4590_s2 + $0x18] sm:$0xff] }
  0x2e   :  { %247 = vmatpush1.msra.mxu1 %v79_v30  ;;  %697 = vmatprep.subr.mxu0 %v2776_v11  ;;  %v3126_v11 = vld [vmem:[%s4591_s0 + $0x28] sm:$0xff]  ;;  %v3404_v30 = vld [vmem:[%s4590_s2 + $0x10] sm:$0xff] }
  0x2f   :  { %206 = vmatmul.mubr.f32.gmra.mxu1 %v3084_v4  ;;  %248 = vmatprep.subr.mxu1 %v76_v32 }
  0x30   :  { %249 = vmatpush1.msra.mxu1 %v75_v6  ;;  %211 = vmatprep.mubr.f32.mxu1 %v4596_v3 }
  0x31   :  { %250 = vmatprep.subr.mxu1 %v72_v34  ;;  %698 = vmatpush1.msra.mxu0 %v2785_v13  ;;  %v59_v13 = vld [vmem:[%s4589_s1 + $0xb0] sm:$0xff] }
  0x32   :  { %251 = vmatpush1.msra.mxu1 %v71_v36  ;;  %699 = vmatprep.subr.mxu0 %v2794_v15  ;;  %v3147_v15 = vld [vmem:[%s4591_s0 + $0x30] sm:$0xff] }
  0x33   :  { %212 = vmatmul.mubr.f32.gmra.mxu1 %v3105_v8  ;;  %252 = vmatprep.subr.mxu1 %v68_v38 }
  0x34   :  { %253 = vmatpush1.msra.mxu1 %v67_v10  ;;  %217 = vmatprep.mubr.f32.mxu1 %v4596_v3 }
  0x35   :  { %254 = vmatprep.subr.mxu1 %v64_v40  ;;  %700 = vmatpush1.msra.mxu0 %v2803_v17  ;;  %v51_v17 = vld [vmem:[%s4589_s1 + $0x70] sm:$0xff] }
  0x36   :  { %255 = vmatpush1.msra.mxu1 %v63_v42  ;;  %701 = vmatprep.subr.mxu0 %v2812_v19  ;;  %v3168_v19 = vld [vmem:[%s4591_s0 + $0x38] sm:$0xff] }
  0x37   :  { %218 = vmatmul.mubr.f32.gmra.mxu1 %v3126_v11  ;;  %256 = vmatprep.subr.mxu1 %v60_v44 }
  0x38   :  { %257 = vmatpush1.msra.mxu1 %v59_v13  ;;  %223 = vmatprep.mubr.f32.mxu1 %v4596_v3 }
  0x39   :  { %258 = vmatprep.subr.mxu1 %v56_v46  ;;  %702 = vmatpush1.msra.mxu0 %v2821_v21  ;;  %v43_v21 = vld [vmem:[%s4589_s1 + $0x30] sm:$0xff] }
  0x3a   :  { %259 = vmatpush1.msra.mxu1 %v55_v48  ;;  %703 = vmatprep.subr.mxu0 %v2830_v23  ;;  %v3189_v23 = vld [vmem:[%s4590_s2 + $0x1f8] sm:$0xff] }
  0x3b   :  { %224 = vmatmul.mubr.f32.gmra.mxu1 %v3147_v15  ;;  %260 = vmatprep.subr.mxu1 %v52_v50 }
  0x3c   :  { %261 = vmatpush1.msra.mxu1 %v51_v17  ;;  %229 = vmatprep.mubr.f32.mxu1 %v4596_v3 }
  0x3d   :  { %262 = vmatprep.subr.mxu1 %v48_v52  ;;  %704 = vmatpush1.msra.mxu0 %v2839_v25  ;;  %v3194_v25 = vld [vmem:[%s4590_s2 + $0x1f0] sm:$0xff] }
  0x3e   :  { %263 = vmatpush1.msra.mxu1 %v47_v54  ;;  %705 = vmatprep.subr.mxu0 %v2848_v27  ;;  %v3215_v27 = vld [vmem:[%s4590_s2 + $0x1b8] sm:$0xff] }
  0x3f   :  { %230 = vmatmul.mubr.f32.gmra.mxu1 %v3168_v19  ;;  %264 = vmatprep.subr.mxu1 %v44_v56 }
  0x40   :  { %265 = vmatpush1.msra.mxu1 %v43_v21  ;;  %300 = vmatprep.mubr.f32.mxu1 %v4596_v3 }
  0x41   :  { %266 = vmatprep.subr.mxu1 %v40_v58  ;;  %706 = vmatpush1.msra.mxu0 %v2857_v29  ;;  %v3221_v29 = vld [vmem:[%s4590_s2 + $0x1b0] sm:$0xff] }
  0x42   :  { %267 = vmatpush1.msra.mxu1 %v39_v60  ;;  %707 = vmatprep.subr.mxu0 %v2866_v31  ;;  %v3243_v31 = vld [vmem:[%s4590_s2 + $0x178] sm:$0xff] }
  0x43   :  { %301 = vmatmul.mubr.f32.vlgmr.msra.gmra.mxu1 %v3016_v0  ;;  %521 = vmatprep.subr.mxu1 %v3189_v23  ;;  %v3228_v0 = vld [vmem:[%s4590_s2 + $0x198] sm:$0xff] }
  0x44   :  { %522 = vmatpush1.msra.mxu1 %v3194_v25  ;;  %306 = vmatprep.mubr.f32.mxu1 %v4596_v3 }
  0x45   :  { %523 = vmatprep.subr.mxu1 %v3200_v62  ;;  %708 = vmatpush1.msra.mxu0 %v2875_v33  ;;  %v3249_v33 = vld [vmem:[%s4590_s2 + $0x170] sm:$0xff] }
  0x46   :  { %524 = vmatpush1.msra.mxu1 %v3208_v1  ;;  %709 = vmatprep.subr.mxu0 %v2884_v35  ;;  %v3271_v35 = vld [vmem:[%s4590_s2 + $0x138] sm:$0xff] }
  0x47   :  { %307 = vmatmul.mubr.f32.gmra.mxu1 %v3042_v12  ;;  %525 = vmatprep.subr.mxu1 %v3215_v27  ;;  %v3284_v12 = vld [vmem:[%s4590_s2 + $0x118] sm:$0xff] }
  0x48   :  { %526 = vmatpush1.msra.mxu1 %v3221_v29  ;;  %312 = vmatprep.mubr.f32.mxu1 %v4596_v3 }
  0x49   :  { %527 = vmatprep.subr.mxu1 %v3228_v0  ;;  %710 = vmatpush1.msra.mxu0 %v2893_v37  ;;  %v3277_v37 = vld [vmem:[%s4590_s2 + $0x130] sm:$0xff] }
  0x4a   :  { %528 = vmatpush1.msra.mxu1 %v3236_v2  ;;  %711 = vmatprep.subr.mxu0 %v2902_v39  ;;  %v3299_v39 = vld [vmem:[%s4590_s2 + $0xf8] sm:$0xff] }
  0x4b   :  { %313 = vmatmul.mubr.f32.gmra.mxu1 %v3063_v22  ;;  %529 = vmatprep.subr.mxu1 %v3243_v31  ;;  %v3348_v22 = vld [vmem:[%s4590_s2 + $0x90] sm:$0xff] }
  0x4c   :  { %530 = vmatpush1.msra.mxu1 %v3249_v33  ;;  %318 = vmatprep.mubr.f32.mxu1 %v4596_v3 }
  0x4d   :  { %531 = vmatprep.subr.mxu1 %v3256_v7  ;;  %712 = vmatpush1.msra.mxu0 %v2911_v41  ;;  %v3305_v41 = vld [vmem:[%s4590_s2 + $0xf0] sm:$0xff] }
  0x4e   :  { %532 = vmatpush1.msra.mxu1 %v3264_v9  ;;  %713 = vmatprep.subr.mxu0 %v2920_v43  ;;  %v3327_v43 = vld [vmem:[%s4590_s2 + $0xb8] sm:$0xff] }
  0x4f   :  { %319 = vmatmul.mubr.f32.gmra.mxu1 %v3084_v4  ;;  %533 = vmatprep.subr.mxu1 %v3271_v35 }
  0x50   :  { %534 = vmatpush1.msra.mxu1 %v3277_v37  ;;  %324 = vmatprep.mubr.f32.mxu1 %v4596_v3 }
  0x51   :  { %535 = vmatprep.subr.mxu1 %v3284_v12  ;;  %714 = vmatpush1.msra.mxu0 %v2929_v45  ;;  %v3333_v45 = vld [vmem:[%s4590_s2 + $0xb0] sm:$0xff] }
  0x52   :  { %536 = vmatpush1.msra.mxu1 %v3292_v14  ;;  %715 = vmatprep.subr.mxu0 %v2938_v47  ;;  %v3355_v47 = vld [vmem:[%s4590_s2 + $0x78] sm:$0xff] }
  0x53   :  { %325 = vmatmul.mubr.f32.gmra.mxu1 %v3105_v8  ;;  %537 = vmatprep.subr.mxu1 %v3299_v39 }
  0x54   :  { %538 = vmatpush1.msra.mxu1 %v3305_v41  ;;  %330 = vmatprep.mubr.f32.mxu1 %v4596_v3 }
  0x55   :  { %539 = vmatprep.subr.mxu1 %v3312_v16  ;;  %716 = vmatpush1.msra.mxu0 %v2947_v49  ;;  %v3361_v49 = vld [vmem:[%s4590_s2 + $0x70] sm:$0xff] }
  0x56   :  { %540 = vmatpush1.msra.mxu1 %v3320_v18  ;;  %717 = vmatprep.subr.mxu0 %v2956_v51  ;;  %v3383_v51 = vld [vmem:[%s4590_s2 + $0x38] sm:$0xff] }
  0x57   :  { %331 = vmatmul.mubr.f32.gmra.mxu1 %v3126_v11  ;;  %541 = vmatprep.subr.mxu1 %v3327_v43 }
  0x58   :  { %542 = vmatpush1.msra.mxu1 %v3333_v45  ;;  %336 = vmatprep.mubr.f32.mxu1 %v4596_v3 }
  0x59   :  { %543 = vmatprep.subr.mxu1 %v3340_v20  ;;  %718 = vmatpush1.msra.mxu0 %v2965_v53  ;;  %v3389_v53 = vld [vmem:[%s4590_s2 + $0x30] sm:$0xff] }
  0x5a   :  { %544 = vmatpush1.msra.mxu1 %v3348_v22  ;;  %719 = vmatprep.subr.mxu0 %v2974_v55  ;;  %v103_v55 = vlaneseq }
  0x5b   :  { %337 = vmatmul.mubr.f32.gmra.mxu1 %v3147_v15  ;;  %545 = vmatprep.subr.mxu1 %v3355_v47 }
  0x5c   :  { %546 = vmatpush1.msra.mxu1 %v3361_v49  ;;  %342 = vmatprep.mubr.f32.mxu1 %v4596_v3 }
  0x5d   :  { %547 = vmatprep.subr.mxu1 %v3368_v24  ;;  %720 = vmatpush1.msra.mxu0 %v2983_v57  ;;  %v104_v57 = vshrl.u32 %v103_v55, 7 }
  0x5e   :  { %548 = vmatpush1.msra.mxu1 %v3376_v26  ;;  %721 = vmatprep.subr.mxu0 %v2992_v59 }
  0x5f   :  { %343 = vmatmul.mubr.f32.gmra.mxu1 %v3168_v19  ;;  %549 = vmatprep.subr.mxu1 %v3383_v51  ;;  %v105_v59 = vsub.s32 0, %v104_v57 }
  0x60   :  { %550 = vmatpush1.msra.mxu1 %v3389_v53  ;;  %585 = vmatprep.mubr.f32.mxu1 %v4596_v3 }
  0x61   :  { %551 = vmatprep.subr.mxu1 %v3396_v28  ;;  %722 = vmatpush1.msra.mxu0 %v3001_v61  ;;  %v101_v61 = vld [vmem:[%s4592_s3] sm:$0xf] }
  0x62   :  { %552 = vmatpush1.msra.mxu1 %v3404_v30  ;;  %723 = vmatprep.subr.mxu0 %v3010_v63  ;;  %v106_v32 = vrot.slane %v101_v61, %v105_v59 }
  0x63   :  { %586 = vmatmul.mubr.f32.vlgmr.msra.gmra.mxu1 %v4596_v3  ;;  %764 = vmatprep.subr.mxu1 %v3189_v23 }
  0x64   :  { %765 = vmatpush1.msra.mxu1 %v3194_v25  ;;  %724 = vmatpush1.msra.mxu0 %v3028_v5  ;;  %v109_v5 = vsub.s32 1, %v104_v57 }
  0x65   :  { %766 = vmatprep.subr.mxu1 %v3200_v62  ;;  %757 = vmatprep.mubr.f32.mxu0 %v4596_v3 }
  0x66   :  { %767 = vmatpush1.msra.mxu1 %v3208_v1  ;;  %828 = vmatprep.mubr.f32.mxu1 %v4596_v3  ;;  %v110_v34 = vrot.slane %v101_v61, %v109_v5 }
  0x67   :  { %768 = vmatprep.subr.mxu1 %v3215_v27 }
  0x68   :  { %769 = vmatpush1.msra.mxu1 %v3221_v29 }
  0x69   :  { %770 = vmatprep.subr.mxu1 %v3228_v0 }
  0x6a   :  { %771 = vmatpush1.msra.mxu1 %v3236_v2 }
  0x6b   :  { %772 = vmatprep.subr.mxu1 %v3243_v31 }
  0x6c   :  { %773 = vmatpush1.msra.mxu1 %v3249_v33 }
  0x6d   :  { %774 = vmatprep.subr.mxu1 %v3256_v7 }
  0x6e   :  { %775 = vmatpush1.msra.mxu1 %v3264_v9 }
  0x6f   :  { %776 = vmatprep.subr.mxu1 %v3271_v35 }
  0x70   :  { %777 = vmatpush1.msra.mxu1 %v3277_v37 }
  0x71   :  { %778 = vmatprep.subr.mxu1 %v3284_v12 }
  0x72   :  { %779 = vmatpush1.msra.mxu1 %v3292_v14 }
  0x73   :  { %780 = vmatprep.subr.mxu1 %v3299_v39 }
  0x74   :  { %781 = vmatpush1.msra.mxu1 %v3305_v41 }
  0x75   :  { %782 = vmatprep.subr.mxu1 %v3312_v16 }
  0x76   :  { %783 = vmatpush1.msra.mxu1 %v3320_v18 }
  0x77   :  { %784 = vmatprep.subr.mxu1 %v3327_v43 }
  0x78   :  { %785 = vmatpush1.msra.mxu1 %v3333_v45 }
  0x79   :  { %786 = vmatprep.subr.mxu1 %v3340_v20 }
  0x7a   :  { %787 = vmatpush1.msra.mxu1 %v3348_v22 }
  0x7b   :  { %788 = vmatprep.subr.mxu1 %v3355_v47 }
  0x7c   :  { %789 = vmatpush1.msra.mxu1 %v3361_v49 }
  0x7d   :  { %790 = vmatprep.subr.mxu1 %v3368_v24 }
  0x7e   :  { %791 = vmatpush1.msra.mxu1 %v3376_v26 }
  0x7f   :  { %792 = vmatprep.subr.mxu1 %v3383_v51 }
  0x80   :  { %793 = vmatpush1.msra.mxu1 %v3389_v53 }
  0x81   :  { %794 = vmatprep.subr.mxu1 %v3396_v28 }
  0x82   :  { %795 = vmatpush1.msra.mxu1 %v3404_v30 }
  0x83   :  { %1007 = vmatprep.subr.mxu1 %v3189_v23 }
  0xe2   :  { %v189_v63 = vpop.f32.mrf.mxu1 }
  0xe4   :  { %v191_v4 = vpop.f32.mrf.mxu1 }
  0xe7   :  { %v195_v6 = vpop.f32.mrf.mxu1 }
  0xe8   :  { %v3453_v36 = vadd.f32 %v195_v6, %v106_v32 }
  0xe9   :  { %v197_v8 = vpop.f32.mrf.mxu1 }
  0xea   :  { %v3455_v38 = vadd.f32 %v197_v8, %v110_v34  ;;  %v516_v8 = vpop.f32.mrf.mxu0 }
  0xeb   :  { %v201_v10 = vpop.f32.mrf.mxu1 }
  0xec   :  { %v3457_v40 = vadd.f32 %v201_v10, %v106_v32 }
  0xed   :  { %v203_v42 = vpop.f32.mrf.mxu1 }
  0xee   :  { %v3459_v11 = vadd.f32 %v203_v42, %v110_v34 }
  0xef   :  { %v207_v44 = vpop.f32.mrf.mxu1 }
  0xf0   :  { %v3461_v13 = vadd.f32 %v207_v44, %v106_v32  ;;  %v113_v44 = vsub.s32 2, %v104_v57 }
  0xf1   :  { %v209_v46 = vpop.f32.mrf.mxu1 }
  0xf2   :  { %4632 = vst [vmem:[#allocation6_spill] sm:$0xff] %v3461_v13  ;;  %v3463_v48 = vadd.f32 %v209_v46, %v110_v34 }
  0xf3   :  { %v213_v15 = vpop.f32.mrf.mxu1 }
  0xf4   :  { %4633 = vst [vmem:[#allocation7_spill] sm:$0xff] %v3463_v48  ;;  %v3465_v50 = vadd.f32 %v213_v15, %v106_v32  ;;  %v192_v15 = vadd.f32 %v191_v4, %v110_v34 }
  0xf5   :  { %v215_v17 = vpop.f32.mrf.mxu1 }
  0xf6   :  { %4634 = vst [vmem:[#allocation8_spill] sm:$0xff] %v3465_v50  ;;  %v3467_v52 = vadd.f32 %v215_v17, %v110_v34  ;;  %v117_v17 = vsub.s32 3, %v104_v57 }
  0xf7   :  { %v219_v54 = vpop.f32.mrf.mxu1 }
  0xf8   :  { %4635 = vst [vmem:[#allocation9_spill] sm:$0xff] %v3467_v52  ;;  %v3469_v19 = vadd.f32 %v219_v54, %v106_v32  ;;  %v190_v54 = vadd.f32 %v189_v63, %v106_v32 }
  0xf9   :  { %v221_v56 = vpop.f32.mrf.mxu1 }
  0xfa   :  { %4636 = vst [vmem:[#allocation10_spill] sm:$0xff] %v3469_v19  ;;  %v3471_v21 = vadd.f32 %v221_v56, %v110_v34  ;;  %v518_v56 = vpop.f32.mrf.mxu0  ;;  %v118_v19 = vrot.slane %v101_v61, %v117_v17 }
  0xfb   :  { %v225_v58 = vpop.f32.mrf.mxu1 }
  0xfc   :  { %4637 = vst [vmem:[#allocation11_spill] sm:$0xff] %v3471_v21  ;;  %v3473_v60 = vadd.f32 %v225_v58, %v106_v32  ;;  %v114_v21 = vrot.slane %v101_v61, %v113_v44 }
  0xfd   :  { %v227_v55 = vpop.f32.mrf.mxu1 }
  0xfe   :  { %4638 = vst [vmem:[#allocation12_spill] sm:$0xff] %v3473_v60  ;;  %v3475_v59 = vadd.f32 %v227_v55, %v110_v34  ;;  %v593_v60 = vadd.f32 %v518_v56, %v192_v15 }
  0xff   :  { %v231_v5 = vpop.f32.mrf.mxu1 }
 0x100   :  { %4639 = vst [vmem:[#allocation13_spill] sm:$0xff] %v3475_v59  ;;  %v3477_v6 = vadd.f32 %v231_v5, %v106_v32  ;;  %v592_v59 = vadd.f32 %v516_v8, %v190_v54 }
 0x101   :  { %v233_v10 = vpop.f32.mrf.mxu1 }
 0x102   :  { %4640 = vst [vmem:[#allocation14_spill] sm:$0xff] %v3477_v6  ;;  %v3479_v42 = vadd.f32 %v233_v10, %v110_v34  ;;  %v2474_v10 = vmul.f32 -1.442695, %v593_v60  ;;  %v2473_v50 = vmul.f32 -1.442695, %v592_v59 }
 0x103   :  { %v302_v46 = vpop.f32.mrf.mxu1 }
 0x104   :  { %4641 = vst [vmem:[#allocation15_spill] sm:$0xff] %v3479_v42  ;;  %2567 = vpow2.f32 %v2474_v10 }
 0x105   :  { %v304_v3 = vpop.f32.mrf.mxu1  ;;  %2569 = vpow2.f32 %v2473_v50 }
 0x107   :  { %v308_v58 = vpop.f32.mrf.mxu1 }
 0x108   :  { %v3481_v55 = vadd.f32 %v308_v58, %v114_v21 }
 0x109   :  { %v310_v5 = vpop.f32.mrf.mxu1 }
 0x10a   :  { %v3483_v6 = vadd.f32 %v310_v5, %v118_v19 }
 0x10b   :  { %v314_v52 = vpop.f32.mrf.mxu1 }
 0x10c   :  { %v3485_v42 = vadd.f32 %v314_v52, %v114_v21 }
 0x10d   :  { %v316_v4 = vpop.f32.mrf.mxu1 }
 0x10e   :  { %4642 = vst [vmem:[#allocation16_spill] sm:$0xff] %v3485_v42  ;;  %v3487_v57 = vadd.f32 %v316_v4, %v118_v19 }
 0x10f   :  { %v320_v63 = vpop.f32.mrf.mxu1 }
 0x110   :  { %v3489_v32 = vadd.f32 %v320_v63, %v114_v21 }
 0x111   :  { %v322_v61 = vpop.f32.mrf.mxu1  ;;  %v2568_v5 = vpop.eup %2567 }
 0x112   :  { %4643 = vst [vmem:[#allocation17_spill] sm:$0xff] %v3489_v32  ;;  %v3491_v34 = vadd.f32 %v322_v61, %v118_v19  ;;  %v2570_v10 = vpop.eup %2569  ;;  %v605_v61 = vadd.f32 1.0, %v2568_v5 }
 0x113   :  { %v326_v8 = vpop.f32.mrf.mxu1 }
 0x114   :  { %4644 = vst [vmem:[#allocation18_spill] sm:$0xff] %v3491_v34  ;;  %v3493_v44 = vadd.f32 %v326_v8, %v114_v21  ;;  %2571 = vrcp.f32 %v605_v61  ;;  %v3719_v61 = vld [vmem:[%s4590_s2 + $0x28] sm:$0xff] }
 0x115   :  { %v328_v15 = vpop.f32.mrf.mxu1  ;;  %4659 = vst [vmem:[#allocation32_spill] sm:$0xff] %v3719_v61 }
 0x116   :  { %4645 = vst [vmem:[#allocation19_spill] sm:$0xff] %v3493_v44  ;;  %v3495_v17 = vadd.f32 %v328_v15, %v118_v19  ;;  %v599_v15 = vadd.f32 1.0, %v2570_v10 }
 0x117   :  { %v332_v52 = vpop.f32.mrf.mxu1 }
 0x118   :  { %4646 = vst [vmem:[#allocation20_spill] sm:$0xff] %v3495_v17  ;;  %v3497_v60 = vadd.f32 %v332_v52, %v114_v21  ;;  %v303_v17 = vadd.f32 %v302_v46, %v114_v21  ;;  %2573 = vrcp.f32 %v599_v15  ;;  %v3731_v15 = vld [vmem:[%s4590_s2 + $0x8] sm:$0xff] }
 0x119   :  { %v334_v59 = vpop.f32.mrf.mxu1  ;;  %4661 = vst [vmem:[#allocation34_spill] sm:$0xff] %v3731_v15 }
 0x11a   :  { %4647 = vst [vmem:[#allocation21_spill] sm:$0xff] %v3497_v60  ;;  %v3499_v54 = vadd.f32 %v334_v59, %v118_v19  ;;  %v305_v59 = vadd.f32 %v304_v3, %v118_v19 }
 0x11b   :  { %v338_v56 = vpop.f32.mrf.mxu1 }
 0x11c   :  { %4648 = vst [vmem:[#allocation22_spill] sm:$0xff] %v3499_v54  ;;  %v3501_v58 = vadd.f32 %v338_v56, %v114_v21 }
 0x11d   :  { %v340_v50 = vpop.f32.mrf.mxu1 }
 0x11e   :  { %4649 = vst [vmem:[#allocation23_spill] sm:$0xff] %v3501_v58  ;;  %v3503_v4 = vadd.f32 %v340_v50, %v118_v19 }
 0x11f   :  { %v344_v63 = vpop.f32.mrf.mxu1 }
 0x120   :  { %4650 = vst [vmem:[#allocation24_spill] sm:$0xff] %v3503_v4  ;;  %v3505_v8 = vadd.f32 %v344_v63, %v114_v21 }
 0x121   :  { %v346_v44 = vpop.f32.mrf.mxu1  ;;  %v2572_v50 = vpop.eup %2571 }
 0x122   :  { %4651 = vst [vmem:[#allocation25_spill] sm:$0xff] %v3505_v8  ;;  %v3507_v52 = vadd.f32 %v346_v44, %v118_v19  ;;  %v616_v63 = vmul.f32 0.0, %v2572_v50 }
 0x123   :  { %v587_v60 = vpop.f32.mrf.mxu1 }
 0x124   :  { %4652 = vst [vmem:[#allocation26_spill] sm:$0xff] %v3507_v52  ;;  %v594_v54 = vadd.f32 %v587_v60, %v303_v17  ;;  %v3689_v17 = vld [vmem:[%s4590_s2 + $0x80] sm:$0xff]  ;;  %v3695_v60 = vld [vmem:[%s4590_s2 + $0x68] sm:$0xff] }
 0x125   :  { %v589_v56 = vpop.f32.mrf.mxu1  ;;  %v2574_v4 = vpop.eup %2573  ;;  %4655 = vst [vmem:[#allocation28_spill] sm:$0xff] %v3695_v60 }
 0x126   :  { %2575 = vtanh.f32 %v594_v54  ;;  %v595_v58 = vadd.f32 %v589_v56, %v305_v59  ;;  %v3701_v54 = vld [vmem:[%s4590_s2 + $0x60] sm:$0xff] }
 0x127   :  { %4656 = vst [vmem:[#allocation29_spill] sm:$0xff] %v3701_v54  ;;  %v3737_v59 = vld [vmem:[%s4590_s2] sm:$0xff] }
 0x128   :  { %v2475_v32 = vmul.f32 -1.442695, %v595_v58  ;;  %v3707_v58 = vld [vmem:[%s4590_s2 + $0x48] sm:$0xff]  ;;  %4662 = vst [vmem:[#allocation35_spill] sm:$0xff] %v3737_v59 }
 0x129   :  { %4657 = vst [vmem:[#allocation30_spill] sm:$0xff] %v3707_v58 }
 0x12a   :  { %2577 = vpow2.f32 %v2475_v32  ;;  %v4654_v32 = vmov 0.0  }
 0x133   :  { %v2576_v5 = vpop.eup %2575 }
 0x134   :  { %v617_v8 = vmul.f32 %v2576_v5, %v2574_v4  ;;  %v3713_v4 = vld [vmem:[%s4590_s2 + $0x40] sm:$0xff] }
 0x135   :  { %4658 = vst [vmem:[#allocation31_spill] sm:$0xff] %v3713_v4 }
 0x136   :  { %v3509_v10 = vadd.f32 %v617_v8, %v616_v63  ;;  %v3725_v8 = vld [vmem:[%s4590_s2 + $0x20] sm:$0xff] }
 0x137   :  { %v2578_v21 = vpop.eup %2577  ;;  %4660 = vst [vmem:[#allocation33_spill] sm:$0xff] %v3725_v8 }
 0x138   :  { %v612_v46 = vadd.f32 1.0, %v2578_v21  ;;  %2579 = vtanh.f32 %v3509_v10 }
 0x13a   :  { %2581 = vrcp.f32 %v612_v46 }
 0x145   :  { %v2580_v3 = vpop.eup %2579 }
 0x147   :  { %v2582_v19 = vpop.eup %2581 }
 0x148   :  { %v3512_v44 = vmul.f32 %v2582_v19, %v2580_v3 }
 0x14a   :  { %4653 = vst [vmem:[#allocation27_spill] sm:$0xff] %v3512_v44  ;;  %758 = vmatmul.mubr.f32.vlgmr.msra.gmra.mxu0 %v3512_v44  ;;  %829 = vmatmul.mubr.f32.vlgmr.msra.gmra.mxu1 %v3512_v44 }
 0x14b   :  { %1008 = vmatpush1.msra.mxu1 %v3194_v25  ;;  %1000 = vmatprep.mubr.f32.mxu0 %v4654_v32 }
 0x14c   :  { %1009 = vmatprep.subr.mxu1 %v3200_v62  ;;  %1071 = vmatprep.mubr.f32.mxu1 %v4654_v32 }
 0x14d   :  { %1010 = vmatpush1.msra.mxu1 %v3208_v1 }
 0x14e   :  { %1011 = vmatprep.subr.mxu1 %v3215_v27 }
 0x14f   :  { %1012 = vmatpush1.msra.mxu1 %v3221_v29 }
 0x150   :  { %1013 = vmatprep.subr.mxu1 %v3228_v0 }
 0x151   :  { %1014 = vmatpush1.msra.mxu1 %v3236_v2 }
 0x152   :  { %1015 = vmatprep.subr.mxu1 %v3243_v31 }
 0x153   :  { %1016 = vmatpush1.msra.mxu1 %v3249_v33 }
 0x154   :  { %1017 = vmatprep.subr.mxu1 %v3256_v7  ;;  %v3553_v7 = vld [vmem:[%s4590_s2 + $0x1e8] sm:$0xff] }
 0x155   :  { %1018 = vmatpush1.msra.mxu1 %v3264_v9  ;;  %936 = vmatprep.subr.mxu0 %v3553_v7  ;;  %v3559_v9 = vld [vmem:[%s4590_s2 + $0x1e0] sm:$0xff] }
 0x156   :  { %1019 = vmatprep.subr.mxu1 %v3271_v35  ;;  %937 = vmatpush1.msra.mxu0 %v3559_v9  ;;  %v3565_v35 = vld [vmem:[%s4590_s2 + $0x1c8] sm:$0xff] }
 0x157   :  { %1020 = vmatpush1.msra.mxu1 %v3277_v37  ;;  %938 = vmatprep.subr.mxu0 %v3565_v35  ;;  %v3577_v37 = vld [vmem:[%s4590_s2 + $0x1a8] sm:$0xff] }
 0x158   :  { %1021 = vmatprep.subr.mxu1 %v3284_v12  ;;  %v3583_v12 = vld [vmem:[%s4590_s2 + $0x1a0] sm:$0xff] }
 0x159   :  { %1022 = vmatpush1.msra.mxu1 %v3292_v14  ;;  %v3589_v14 = vld [vmem:[%s4590_s2 + $0x188] sm:$0xff] }
 0x15a   :  { %1023 = vmatprep.subr.mxu1 %v3299_v39  ;;  %v3595_v39 = vld [vmem:[%s4590_s2 + $0x180] sm:$0xff] }
 0x15b   :  { %1024 = vmatpush1.msra.mxu1 %v3305_v41  ;;  %v3601_v41 = vld [vmem:[%s4590_s2 + $0x168] sm:$0xff] }
 0x15c   :  { %1025 = vmatprep.subr.mxu1 %v3312_v16  ;;  %v3607_v16 = vld [vmem:[%s4590_s2 + $0x160] sm:$0xff] }
 0x15d   :  { %1026 = vmatpush1.msra.mxu1 %v3320_v18  ;;  %v3613_v18 = vld [vmem:[%s4590_s2 + $0x148] sm:$0xff] }
 0x15e   :  { %1027 = vmatprep.subr.mxu1 %v3327_v43  ;;  %v3619_v43 = vld [vmem:[%s4590_s2 + $0x140] sm:$0xff] }
 0x15f   :  { %1028 = vmatpush1.msra.mxu1 %v3333_v45  ;;  %v3625_v45 = vld [vmem:[%s4590_s2 + $0x128] sm:$0xff] }
 0x160   :  { %1029 = vmatprep.subr.mxu1 %v3340_v20  ;;  %v3631_v20 = vld [vmem:[%s4590_s2 + $0x120] sm:$0xff] }
 0x161   :  { %1030 = vmatpush1.msra.mxu1 %v3348_v22  ;;  %v3637_v22 = vld [vmem:[%s4590_s2 + $0x108] sm:$0xff] }
 0x162   :  { %1031 = vmatprep.subr.mxu1 %v3355_v47  ;;  %v3642_v47 = vld [vmem:[%s4590_s2 + $0x100] sm:$0xff] }
 0x163   :  { %1032 = vmatpush1.msra.mxu1 %v3361_v49  ;;  %v3647_v49 = vld [vmem:[%s4590_s2 + $0xe8] sm:$0xff] }
 0x164   :  { %1033 = vmatprep.subr.mxu1 %v3368_v24  ;;  %v3653_v24 = vld [vmem:[%s4590_s2 + $0xe0] sm:$0xff] }
 0x165   :  { %1034 = vmatpush1.msra.mxu1 %v3376_v26  ;;  %v3659_v26 = vld [vmem:[%s4590_s2 + $0xc8] sm:$0xff] }
 0x166   :  { %1035 = vmatprep.subr.mxu1 %v3383_v51  ;;  %v3665_v51 = vld [vmem:[%s4590_s2 + $0xc0] sm:$0xff] }
 0x167   :  { %1036 = vmatpush1.msra.mxu1 %v3389_v53  ;;  %v3671_v53 = vld [vmem:[%s4590_s2 + $0xa8] sm:$0xff] }
 0x168   :  { %1037 = vmatprep.subr.mxu1 %v3396_v28  ;;  %v3677_v28 = vld [vmem:[%s4590_s2 + $0xa0] sm:$0xff] }
 0x169   :  { %1038 = vmatpush1.msra.mxu1 %v3404_v30  ;;  %v3683_v30 = vld [vmem:[%s4590_s2 + $0x88] sm:$0xff] }
 0x16a   :  { %1250 = vmatprep.subr.mxu1 %v3189_v23  ;;  %v3571_v23 = vld [vmem:[%s4590_s2 + $0x1c0] sm:$0xff] }
 0x16b   :  { %939 = vmatpush1.msra.mxu0 %v3571_v23 }
 0x16c   :  { %940 = vmatprep.subr.mxu0 %v3577_v37 }
 0x16d   :  { %941 = vmatpush1.msra.mxu0 %v3583_v12 }
 0x16e   :  { %942 = vmatprep.subr.mxu0 %v3589_v14 }
 0x16f   :  { %943 = vmatpush1.msra.mxu0 %v3595_v39 }
 0x170   :  { %944 = vmatprep.subr.mxu0 %v3601_v41 }
 0x171   :  { %945 = vmatpush1.msra.mxu0 %v3607_v16 }
 0x172   :  { %946 = vmatprep.subr.mxu0 %v3613_v18 }
 0x173   :  { %947 = vmatpush1.msra.mxu0 %v3619_v43 }
 0x174   :  { %948 = vmatprep.subr.mxu0 %v3625_v45 }
 0x175   :  { %949 = vmatpush1.msra.mxu0 %v3631_v20 }
 0x176   :  { %950 = vmatprep.subr.mxu0 %v3637_v22 }
 0x177   :  { %951 = vmatpush1.msra.mxu0 %v3642_v47 }
 0x178   :  { %952 = vmatprep.subr.mxu0 %v3647_v49 }
 0x179   :  { %953 = vmatpush1.msra.mxu0 %v3653_v24 }
 0x17a   :  { %954 = vmatprep.subr.mxu0 %v3659_v26 }
 0x17b   :  { %955 = vmatpush1.msra.mxu0 %v3665_v51 }
 0x17c   :  { %956 = vmatprep.subr.mxu0 %v3671_v53 }
 0x17d   :  { %957 = vmatpush1.msra.mxu0 %v3677_v28 }
 0x17e   :  { %958 = vmatprep.subr.mxu0 %v3683_v30 }
 0x17f   :  { %959 = vmatpush1.msra.mxu0 %v3689_v17 }
 0x180   :  { %960 = vmatprep.subr.mxu0 %v3695_v60 }
 0x181   :  { %961 = vmatpush1.msra.mxu0 %v3701_v54 }
 0x182   :  { %962 = vmatprep.subr.mxu0 %v3707_v58 }
 0x183   :  { %963 = vmatpush1.msra.mxu0 %v3713_v4 }
 0x184   :  { %964 = vmatprep.subr.mxu0 %v3719_v61 }
 0x185   :  { %965 = vmatpush1.msra.mxu0 %v3725_v8 }
 0x186   :  { %966 = vmatprep.subr.mxu0 %v3731_v15 }
 0x187   :  { %967 = vmatpush1.msra.mxu0 %v3737_v59 }
 0x188   :  { %1179 = vmatprep.subr.mxu0 %v3553_v7 }
 0x20a   :  { %v759_v56 = vpop.f32.mrf.mxu0  ;;  %v830_v46 = vpop.f32.mrf.mxu1 }
 0x20b   :  { %v835_v50 = vadd.f32 %v759_v56, %v3453_v36  ;;  %v837_v44 = vadd.f32 %v830_v46, %v3481_v55  ;;  %v3883_v46 = vld [vmem:[%s4590_s2 + $0x78] sm:$0xff] }
 0x20c   :  { %v761_v5 = vpop.f32.mrf.mxu0  ;;  %v832_v19 = vpop.f32.mrf.mxu1  ;;  %4666 = vst [vmem:[#allocation39_spill] sm:$0xff] %v3883_v46 }
 0x20d   :  { %v2476_v63 = vmul.f32 -1.442695, %v835_v50  ;;  %v836_v21 = vadd.f32 %v761_v5, %v3455_v38  ;;  %v838_v52 = vadd.f32 %v832_v19, %v3483_v6  ;;  %v3889_v19 = vld [vmem:[%s4590_s2 + $0x70] sm:$0xff] }
 0x20e   :  { %4667 = vst [vmem:[#allocation40_spill] sm:$0xff] %v3889_v19 }
 0x20f   :  { %2583 = vpow2.f32 %v2476_v63  ;;  %v2477_v3 = vmul.f32 -1.442695, %v836_v21  ;;  %v2478_v34 = vmul.f32 -1.442695, %v838_v52 }
 0x211   :  { %2585 = vpow2.f32 %v2477_v3 }
 0x212   :  { %2587 = vtanh.f32 %v837_v44  ;;  %v3877_v44 = vld [vmem:[%s4590_s2 + $0x90] sm:$0xff] }
 0x213   :  { %2589 = vpow2.f32 %v2478_v34  ;;  %v3865_v34 = vld [vmem:[%s4590_s2 + $0xb0] sm:$0xff]  ;;  %4665 = vst [vmem:[#allocation38_spill] sm:$0xff] %v3877_v44 }
 0x21c   :  { %v2584_v48 = vpop.eup %2583 }
 0x21d   :  { %v842_v13 = vadd.f32 1.0, %v2584_v48 }
 0x21e   :  { %v2586_v42 = vpop.eup %2585 }
 0x21f   :  { %2591 = vrcp.f32 %v842_v13  ;;  %v848_v36 = vadd.f32 1.0, %v2586_v42  ;;  %v2588_v56 = vpop.eup %2587  ;;  %v3853_v13 = vld [vmem:[%s4590_s2 + $0xd0] sm:$0xff]  ;;  %v3859_v42 = vld [vmem:[%s4590_s2 + $0xb8] sm:$0xff] }
 0x220   :  { %v2590_v38 = vpop.eup %2589 }
 0x221   :  { %2593 = vrcp.f32 %v848_v36  ;;  %v855_v21 = vadd.f32 1.0, %v2590_v38  ;;  %v3895_v36 = vld [vmem:[%s4590_s2 + $0x58] sm:$0xff] }
 0x222   :  { %4668 = vst [vmem:[#allocation41_spill] sm:$0xff] %v3895_v36  ;;  %v3907_v38 = vld [vmem:[%s4590_s2 + $0x38] sm:$0xff] }
 0x223   :  { %2595 = vrcp.f32 %v855_v21  ;;  %4670 = vst [vmem:[#allocation43_spill] sm:$0xff] %v3907_v38 }
 0x22c   :  { %v2592_v50 = vpop.eup %2591 }
 0x22d   :  { %v860_v5 = vmul.f32 %v2592_v50, %v2588_v56  ;;  %v3901_v56 = vld [vmem:[%s4590_s2 + $0x50] sm:$0xff] }
 0x22e   :  { %v2594_v63 = vpop.eup %2593  ;;  %4669 = vst [vmem:[#allocation42_spill] sm:$0xff] %v3901_v56  ;;  %v3913_v50 = vld [vmem:[%s4590_s2 + $0x30] sm:$0xff] }
 0x22f   :  { %v859_v3 = vmul.f32 %v2594_v63, %v3509_v10  ;;  %v3871_v10 = vld [vmem:[%s4590_s2 + $0x98] sm:$0xff]  ;;  %4671 = vst [vmem:[#allocation44_spill] sm:$0xff] %v3913_v50  ;;  %v3925_v63 = vld [vmem:[%s4590_s2 + $0x10] sm:$0xff] }
 0x230   :  { %v2596_v48 = vpop.eup %2595  ;;  %4664 = vst [vmem:[#allocation37_spill] sm:$0xff] %v3871_v10  ;;  %4673 = vst [vmem:[#allocation46_spill] sm:$0xff] %v3925_v63 }
 0x231   :  { %v3748_v6 = vadd.f32 %v860_v5, %v859_v3  ;;  %v3919_v5 = vld [vmem:[%s4590_s2 + $0x18] sm:$0xff] }
 0x232   :  { %4672 = vst [vmem:[#allocation45_spill] sm:$0xff] %v3919_v5 }
 0x233   :  { %2597 = vtanh.f32 %v3748_v6 }
 0x240   :  { %v2598_v55 = vpop.eup %2597 }
 0x241   :  { %v3751_v52 = vmul.f32 %v2598_v55, %v2596_v48 }
 0x243   :  { %4663 = vst [vmem:[#allocation36_spill] sm:$0xff] %v3751_v52  ;;  %1001 = vmatmul.mubr.f32.vlgmr.msra.gmra.mxu0 %v3751_v52  ;;  %1072 = vmatmul.mubr.f32.vlgmr.msra.gmra.mxu1 %v3751_v52 }
 0x244   :  { %1180 = vmatpush1.msra.mxu0 %v3559_v9  ;;  %1251 = vmatpush1.msra.mxu1 %v3194_v25  ;;  %v3801_v25 = vld [vmem:[%s4590_s2 + $0x158] sm:$0xff] }
 0x245   :  { %1181 = vmatprep.subr.mxu0 %v3565_v35  ;;  %1252 = vmatprep.subr.mxu1 %v3200_v62  ;;  %v3807_v62 = vld [vmem:[%s4590_s2 + $0x150] sm:$0xff] }
 0x246   :  { %1182 = vmatpush1.msra.mxu0 %v3571_v23  ;;  %1253 = vmatpush1.msra.mxu1 %v3208_v1  ;;  %v3813_v1 = vld [vmem:[%s4590_s2 + $0x138] sm:$0xff] }
 0x247   :  { %1183 = vmatprep.subr.mxu0 %v3577_v37  ;;  %1254 = vmatprep.subr.mxu1 %v3215_v27  ;;  %v3819_v27 = vld [vmem:[%s4590_s2 + $0x130] sm:$0xff] }
 0x248   :  { %1184 = vmatpush1.msra.mxu0 %v3583_v12  ;;  %1255 = vmatpush1.msra.mxu1 %v3221_v29  ;;  %v3825_v29 = vld [vmem:[%s4590_s2 + $0x118] sm:$0xff] }
 0x249   :  { %1185 = vmatprep.subr.mxu0 %v3589_v14  ;;  %1256 = vmatprep.subr.mxu1 %v3228_v0  ;;  %v3830_v0 = vld [vmem:[%s4590_s2 + $0x110] sm:$0xff] }
 0x24a   :  { %1186 = vmatpush1.msra.mxu0 %v3595_v39  ;;  %1257 = vmatpush1.msra.mxu1 %v3236_v2  ;;  %v3835_v2 = vld [vmem:[%s4590_s2 + $0xf8] sm:$0xff] }
 0x24b   :  { %1187 = vmatprep.subr.mxu0 %v3601_v41  ;;  %1258 = vmatprep.subr.mxu1 %v3243_v31  ;;  %v3841_v31 = vld [vmem:[%s4590_s2 + $0xf0] sm:$0xff] }
 0x24c   :  { %1188 = vmatpush1.msra.mxu0 %v3607_v16  ;;  %1259 = vmatpush1.msra.mxu1 %v3249_v33  ;;  %v3847_v33 = vld [vmem:[%s4590_s2 + $0xd8] sm:$0xff] }
 0x24d   :  { %1189 = vmatprep.subr.mxu0 %v3613_v18  ;;  %1243 = vmatprep.mubr.f32.mxu0 %v4654_v32 }
 0x24e   :  { %1190 = vmatpush1.msra.mxu0 %v3619_v43  ;;  %1314 = vmatprep.mubr.f32.mxu1 %v4654_v32 }
 0x24f   :  { %1191 = vmatprep.subr.mxu0 %v3625_v45  ;;  %1260 = vmatprep.subr.mxu1 %v3801_v25 }
 0x250   :  { %1192 = vmatpush1.msra.mxu0 %v3631_v20  ;;  %1261 = vmatpush1.msra.mxu1 %v3807_v62 }
 0x251   :  { %1193 = vmatprep.subr.mxu0 %v3637_v22  ;;  %1262 = vmatprep.subr.mxu1 %v3813_v1 }
 0x252   :  { %1194 = vmatpush1.msra.mxu0 %v3642_v47  ;;  %1263 = vmatpush1.msra.mxu1 %v3819_v27 }
 0x253   :  { %1195 = vmatprep.subr.mxu0 %v3647_v49  ;;  %1264 = vmatprep.subr.mxu1 %v3825_v29 }
 0x254   :  { %1196 = vmatpush1.msra.mxu0 %v3653_v24  ;;  %1265 = vmatpush1.msra.mxu1 %v3830_v0 }
 0x255   :  { %1197 = vmatprep.subr.mxu0 %v3659_v26  ;;  %1266 = vmatprep.subr.mxu1 %v3835_v2 }
 0x256   :  { %1198 = vmatpush1.msra.mxu0 %v3665_v51  ;;  %1267 = vmatpush1.msra.mxu1 %v3841_v31 }
 0x257   :  { %1199 = vmatprep.subr.mxu0 %v3671_v53  ;;  %1268 = vmatprep.subr.mxu1 %v3847_v33 }
 0x258   :  { %1200 = vmatpush1.msra.mxu0 %v3677_v28  ;;  %1269 = vmatpush1.msra.mxu1 %v3853_v13 }
 0x259   :  { %1201 = vmatprep.subr.mxu0 %v3683_v30  ;;  %1270 = vmatprep.subr.mxu1 %v3859_v42 }
 0x25a   :  { %1202 = vmatpush1.msra.mxu0 %v3689_v17  ;;  %1271 = vmatpush1.msra.mxu1 %v3865_v34 }
 0x25b   :  { %1203 = vmatprep.subr.mxu0 %v3695_v60  ;;  %1272 = vmatprep.subr.mxu1 %v3871_v10 }
 0x25c   :  { %1204 = vmatpush1.msra.mxu0 %v3701_v54  ;;  %1273 = vmatpush1.msra.mxu1 %v3877_v44 }
 0x25d   :  { %1205 = vmatprep.subr.mxu0 %v3707_v58  ;;  %1274 = vmatprep.subr.mxu1 %v3883_v46  ;;  %v4674_v46 = vld [vmem:[#allocation16_spill] sm:$0xff] }
 0x25e   :  { %1206 = vmatpush1.msra.mxu0 %v3713_v4  ;;  %1275 = vmatpush1.msra.mxu1 %v3889_v19 }
 0x25f   :  { %1207 = vmatprep.subr.mxu0 %v3719_v61  ;;  %1276 = vmatprep.subr.mxu1 %v3895_v36 }
 0x260   :  { %1208 = vmatpush1.msra.mxu0 %v3725_v8  ;;  %1277 = vmatpush1.msra.mxu1 %v3901_v56 }
 0x261   :  { %1209 = vmatprep.subr.mxu0 %v3731_v15  ;;  %1278 = vmatprep.subr.mxu1 %v3907_v38 }
 0x262   :  { %1210 = vmatpush1.msra.mxu0 %v3737_v59  ;;  %1279 = vmatpush1.msra.mxu1 %v3913_v50 }
 0x263   :  { %1422 = vmatprep.subr.mxu0 %v3553_v7  ;;  %1280 = vmatprep.subr.mxu1 %v3919_v5 }
 0x264   :  { %1281 = vmatpush1.msra.mxu1 %v3925_v63 }
 0x303   :  { %v1002_v21 = vpop.f32.mrf.mxu0  ;;  %v1073_v38 = vpop.f32.mrf.mxu1 }
 0x304   :  { %v1078_v3 = vadd.f32 %v1002_v21, %v3457_v40  ;;  %v1080_v50 = vadd.f32 %v1073_v38, %v4674_v46  ;;  %v4003_v38 = vld [vmem:[%s4590_s2 + $0x1b8] sm:$0xff] }
 0x305   :  { %v1004_v48 = vpop.f32.mrf.mxu0  ;;  %v1075_v36 = vpop.f32.mrf.mxu1 }
 0x306   :  { %v2479_v55 = vmul.f32 -1.442695, %v1078_v3  ;;  %v1079_v52 = vadd.f32 %v1004_v48, %v3459_v11  ;;  %v1081_v19 = vadd.f32 %v1075_v36, %v3487_v57 }
 0x308   :  { %2599 = vpow2.f32 %v2479_v55  ;;  %v2480_v56 = vmul.f32 -1.442695, %v1079_v52  ;;  %v2481_v44 = vmul.f32 -1.442695, %v1081_v19 }
 0x30a   :  { %2601 = vpow2.f32 %v2480_v56 }
 0x30b   :  { %2603 = vtanh.f32 %v1080_v50  ;;  %v4009_v50 = vld [vmem:[%s4590_s2 + $0x1b0] sm:$0xff] }
 0x30c   :  { %2605 = vpow2.f32 %v2481_v44  ;;  %v3991_v44 = vld [vmem:[%s4590_s2 + $0x1d8] sm:$0xff] }
 0x315   :  { %v2600_v5 = vpop.eup %2599 }
 0x316   :  { %v1085_v10 = vadd.f32 1.0, %v2600_v5  ;;  %v4015_v5 = vld [vmem:[%s4590_s2 + $0x198] sm:$0xff] }
 0x317   :  { %v2602_v63 = vpop.eup %2601 }
 0x318   :  { %2607 = vrcp.f32 %v1085_v10  ;;  %v1091_v40 = vadd.f32 1.0, %v2602_v63  ;;  %v2604_v21 = vpop.eup %2603  ;;  %v3985_v10 = vld [vmem:[%s4590_s2 + $0x1f0] sm:$0xff] }
 0x319   :  { %v2606_v11 = vpop.eup %2605  ;;  %v4021_v63 = vld [vmem:[%s4590_s2 + $0x190] sm:$0xff] }
 0x31a   :  { %2609 = vrcp.f32 %v1091_v40  ;;  %v1098_v56 = vadd.f32 1.0, %v2606_v11  ;;  %v4027_v40 = vld [vmem:[%s4590_s2 + $0x178] sm:$0xff] }
 0x31b   :  { %v4677_v11 = vld [vmem:[#allocation37_spill] sm:$0xff] }
 0x31c   :  { %2611 = vrcp.f32 %v1098_v56  ;;  %v4681_v56 = vld [vmem:[#allocation41_spill] sm:$0xff] }
 0x325   :  { %v2608_v3 = vpop.eup %2607 }
 0x326   :  { %v1103_v48 = vmul.f32 %v2608_v3, %v2604_v21  ;;  %v4033_v21 = vld [vmem:[%s4590_s2 + $0x170] sm:$0xff]  ;;  %v4678_v3 = vld [vmem:[#allocation38_spill] sm:$0xff] }
 0x327   :  { %v2610_v52 = vpop.eup %2609 }
 0x328   :  { %v1102_v55 = vmul.f32 %v2610_v52, %v3748_v6  ;;  %v3979_v6 = vld [vmem:[%s4590_s2 + $0x1f8] sm:$0xff]  ;;  %v4680_v52 = vld [vmem:[#allocation40_spill] sm:$0xff] }
 0x329   :  { %v2612_v46 = vpop.eup %2611  ;;  %4676 = vst [vmem:[#allocation47_spill] sm:$0xff] %v3979_v6  ;;  %1493 = vmatprep.subr.mxu1 %v3979_v6 }
 0x32a   :  { %v3935_v57 = vadd.f32 %v1103_v48, %v1102_v55  ;;  %v4679_v48 = vld [vmem:[#allocation39_spill] sm:$0xff]  ;;  %v4682_v55 = vld [vmem:[#allocation42_spill] sm:$0xff] }
 0x32c   :  { %2613 = vtanh.f32 %v3935_v57 }
 0x339   :  { %v2614_v19 = vpop.eup %2613 }
 0x33a   :  { %v3938_v36 = vmul.f32 %v2614_v19, %v2612_v46  ;;  %v4683_v46 = vld [vmem:[#allocation43_spill] sm:$0xff]  ;;  %v4684_v19 = vld [vmem:[#allocation44_spill] sm:$0xff] }
 0x33c   :  { %4675 = vst [vmem:[#allocation16_spill] sm:$0xff] %v3938_v36  ;;  %1244 = vmatmul.mubr.f32.vlgmr.msra.gmra.mxu0 %v3938_v36  ;;  %1315 = vmatmul.mubr.f32.vlgmr.msra.gmra.mxu1 %v3938_v36  ;;  %v4685_v36 = vld [vmem:[#allocation45_spill] sm:$0xff] }
 0x33d   :  { %1423 = vmatpush1.msra.mxu0 %v3559_v9  ;;  %1486 = vmatprep.mubr.f32.mxu0 %v4654_v32 }
 0x33e   :  { %1424 = vmatprep.subr.mxu0 %v3565_v35  ;;  %1557 = vmatprep.mubr.f32.mxu1 %v4654_v32  ;;  %v4686_v32 = vld [vmem:[#allocation46_spill] sm:$0xff] }
 0x33f   :  { %1425 = vmatpush1.msra.mxu0 %v3571_v23  ;;  %1494 = vmatpush1.msra.mxu1 %v3985_v10 }
 0x340   :  { %1426 = vmatprep.subr.mxu0 %v3577_v37  ;;  %1495 = vmatprep.subr.mxu1 %v3991_v44 }
 0x341   :  { %1427 = vmatpush1.msra.mxu0 %v3583_v12 }
 0x342   :  { %1428 = vmatprep.subr.mxu0 %v3589_v14 }
 0x343   :  { %1429 = vmatpush1.msra.mxu0 %v3595_v39 }
 0x344   :  { %1430 = vmatprep.subr.mxu0 %v3601_v41 }
 0x345   :  { %1431 = vmatpush1.msra.mxu0 %v3607_v16 }
 0x346   :  { %1432 = vmatprep.subr.mxu0 %v3613_v18 }
 0x347   :  { %1433 = vmatpush1.msra.mxu0 %v3619_v43 }
 0x348   :  { %1434 = vmatprep.subr.mxu0 %v3625_v45 }
 0x349   :  { %1435 = vmatpush1.msra.mxu0 %v3631_v20 }
 0x34a   :  { %1436 = vmatprep.subr.mxu0 %v3637_v22 }
 0x34b   :  { %1437 = vmatpush1.msra.mxu0 %v3642_v47 }
 0x34c   :  { %1438 = vmatprep.subr.mxu0 %v3647_v49 }
 0x34d   :  { %1439 = vmatpush1.msra.mxu0 %v3653_v24 }
 0x34e   :  { %1440 = vmatprep.subr.mxu0 %v3659_v26 }
 0x34f   :  { %1441 = vmatpush1.msra.mxu0 %v3665_v51 }
 0x350   :  { %1442 = vmatprep.subr.mxu0 %v3671_v53 }
 0x351   :  { %1443 = vmatpush1.msra.mxu0 %v3677_v28 }
 0x352   :  { %1444 = vmatprep.subr.mxu0 %v3683_v30 }
 0x353   :  { %1445 = vmatpush1.msra.mxu0 %v3689_v17 }
 0x354   :  { %1446 = vmatprep.subr.mxu0 %v3695_v60 }
 0x355   :  { %1447 = vmatpush1.msra.mxu0 %v3701_v54  ;;  %v4689_v54 = vld [vmem:[#allocation18_spill] sm:$0xff] }
 0x356   :  { %1448 = vmatprep.subr.mxu0 %v3707_v58  ;;  %v4688_v58 = vld [vmem:[#allocation7_spill] sm:$0xff] }
 0x357   :  { %1449 = vmatpush1.msra.mxu0 %v3713_v4 }
 0x358   :  { %1450 = vmatprep.subr.mxu0 %v3719_v61 }
 0x359   :  { %1451 = vmatpush1.msra.mxu0 %v3725_v8 }
 0x35a   :  { %1452 = vmatprep.subr.mxu0 %v3731_v15  ;;  %v4687_v15 = vld [vmem:[#allocation6_spill] sm:$0xff] }
 0x35b   :  { %1453 = vmatpush1.msra.mxu0 %v3737_v59 }
 0x35c   :  { %1665 = vmatprep.subr.mxu0 %v3553_v7  ;;  %v3997_v7 = vld [vmem:[%s4590_s2 + $0x1d0] sm:$0xff] }
 0x35d   :  { %1496 = vmatpush1.msra.mxu1 %v3997_v7 }
 0x35e   :  { %1497 = vmatprep.subr.mxu1 %v4003_v38 }
 0x35f   :  { %1498 = vmatpush1.msra.mxu1 %v4009_v50 }
 0x360   :  { %1499 = vmatprep.subr.mxu1 %v4015_v5 }
 0x361   :  { %1500 = vmatpush1.msra.mxu1 %v4021_v63 }
 0x362   :  { %1501 = vmatprep.subr.mxu1 %v4027_v40 }
 0x363   :  { %1502 = vmatpush1.msra.mxu1 %v4033_v21 }
 0x364   :  { %1503 = vmatprep.subr.mxu1 %v3801_v25 }
 0x365   :  { %1504 = vmatpush1.msra.mxu1 %v3807_v62 }
 0x366   :  { %1505 = vmatprep.subr.mxu1 %v3813_v1 }
 0x367   :  { %1506 = vmatpush1.msra.mxu1 %v3819_v27 }
 0x368   :  { %1507 = vmatprep.subr.mxu1 %v3825_v29 }
 0x369   :  { %1508 = vmatpush1.msra.mxu1 %v3830_v0 }
 0x36a   :  { %1509 = vmatprep.subr.mxu1 %v3835_v2 }
 0x36b   :  { %1510 = vmatpush1.msra.mxu1 %v3841_v31 }
 0x36c   :  { %1511 = vmatprep.subr.mxu1 %v3847_v33 }
 0x36d   :  { %1512 = vmatpush1.msra.mxu1 %v3853_v13 }
 0x36e   :  { %1513 = vmatprep.subr.mxu1 %v3859_v42 }
 0x36f   :  { %1514 = vmatpush1.msra.mxu1 %v3865_v34 }
 0x370   :  { %1515 = vmatprep.subr.mxu1 %v4677_v11 }
 0x371   :  { %1516 = vmatpush1.msra.mxu1 %v4678_v3 }
 0x372   :  { %1517 = vmatprep.subr.mxu1 %v4679_v48  ;;  %v4690_v48 = vld [vmem:[#allocation17_spill] sm:$0xff] }
 0x373   :  { %1518 = vmatpush1.msra.mxu1 %v4680_v52 }
 0x374   :  { %1519 = vmatprep.subr.mxu1 %v4681_v56 }
 0x375   :  { %1520 = vmatpush1.msra.mxu1 %v4682_v55 }
 0x376   :  { %1521 = vmatprep.subr.mxu1 %v4683_v46 }
 0x377   :  { %1522 = vmatpush1.msra.mxu1 %v4684_v19 }
 0x378   :  { %1523 = vmatprep.subr.mxu1 %v4685_v36 }
 0x379   :  { %1524 = vmatpush1.msra.mxu1 %v4686_v32 }
 0x37a   :  { %1736 = vmatprep.subr.mxu1 %v3979_v6 }
 0x3fc   :  { %v1245_v59 = vpop.f32.mrf.mxu0  ;;  %v1316_v56 = vpop.f32.mrf.mxu1 }
 0x3fd   :  { %v1321_v8 = vadd.f32 %v1245_v59, %v4687_v15  ;;  %v1323_v36 = vadd.f32 %v1316_v56, %v4690_v48 }
 0x3fe   :  { %v1247_v61 = vpop.f32.mrf.mxu0  ;;  %v1318_v46 = vpop.f32.mrf.mxu1 }
 0x3ff   :  { %v2482_v4 = vmul.f32 -1.442695, %v1321_v8  ;;  %v1322_v52 = vadd.f32 %v1247_v61, %v4688_v58  ;;  %v1324_v19 = vadd.f32 %v1318_v46, %v4689_v54 }
 0x401   :  { %2615 = vpow2.f32 %v2482_v4  ;;  %v2483_v55 = vmul.f32 -1.442695, %v1322_v52  ;;  %v2484_v60 = vmul.f32 -1.442695, %v1324_v19  ;;  %v4712_v19 = vld [vmem:[#allocation20_spill] sm:$0xff] }
 0x403   :  { %2617 = vpow2.f32 %v2483_v55 }
 0x404   :  { %2619 = vtanh.f32 %v1323_v36 }
 0x405   :  { %2621 = vpow2.f32 %v2484_v60 }
 0x40e   :  { %v2616_v32 = vpop.eup %2615 }
 0x40f   :  { %v1328_v3 = vadd.f32 1.0, %v2616_v32 }
 0x410   :  { %v2618_v6 = vpop.eup %2617 }
 0x411   :  { %2623 = vrcp.f32 %v1328_v3  ;;  %v1334_v15 = vadd.f32 1.0, %v2618_v6  ;;  %v2620_v8 = vpop.eup %2619 }
 0x412   :  { %v2622_v58 = vpop.eup %2621 }
 0x413   :  { %2625 = vrcp.f32 %v1334_v15  ;;  %v1341_v52 = vadd.f32 1.0, %v2622_v58 }
 0x415   :  { %2627 = vrcp.f32 %v1341_v52 }
 0x41e   :  { %v2624_v4 = vpop.eup %2623 }
 0x41f   :  { %v1346_v61 = vmul.f32 %v2624_v4, %v2620_v8  ;;  %v4713_v8 = vld [vmem:[#allocation19_spill] sm:$0xff] }
 0x420   :  { %v2626_v59 = vpop.eup %2625 }
 0x421   :  { %v1345_v55 = vmul.f32 %v2626_v59, %v3935_v57  ;;  %v4711_v57 = vld [vmem:[#allocation9_spill] sm:$0xff] }
 0x422   :  { %v2628_v32 = vpop.eup %2627 }
 0x423   :  { %v4064_v54 = vadd.f32 %v1346_v61, %v1345_v55 }
 0x425   :  { %2629 = vtanh.f32 %v4064_v54 }
 0x432   :  { %v2630_v36 = vpop.eup %2629 }
 0x433   :  { %v4067_v48 = vmul.f32 %v2630_v36, %v2628_v32 }
 0x435   :  { %1487 = vmatmul.mubr.f32.vlgmr.msra.gmra.mxu0 %v4067_v48  ;;  %1558 = vmatmul.mubr.f32.vlgmr.msra.gmra.mxu1 %v4067_v48 }
 0x436   :  { %1666 = vmatpush1.msra.mxu0 %v3559_v9  ;;  %1737 = vmatpush1.msra.mxu1 %v3985_v10  ;;  %v4691_v9 = vld [vmem:[#allocation38_spill] sm:$0xff] }
 0x437   :  { %1667 = vmatprep.subr.mxu0 %v3565_v35  ;;  %1738 = vmatprep.subr.mxu1 %v3991_v44  ;;  %v4692_v35 = vld [vmem:[#allocation28_spill] sm:$0xff] }
 0x438   :  { %1668 = vmatpush1.msra.mxu0 %v3571_v23  ;;  %1739 = vmatpush1.msra.mxu1 %v3997_v7  ;;  %v4693_v23 = vld [vmem:[#allocation39_spill] sm:$0xff] }
 0x439   :  { %1669 = vmatprep.subr.mxu0 %v3577_v37  ;;  %1740 = vmatprep.subr.mxu1 %v4003_v38  ;;  %v4694_v37 = vld [vmem:[#allocation29_spill] sm:$0xff] }
 0x43a   :  { %1670 = vmatpush1.msra.mxu0 %v3583_v12  ;;  %1741 = vmatpush1.msra.mxu1 %v4009_v50  ;;  %v4695_v12 = vld [vmem:[#allocation40_spill] sm:$0xff] }
 0x43b   :  { %1671 = vmatprep.subr.mxu0 %v3589_v14  ;;  %1742 = vmatprep.subr.mxu1 %v4015_v5  ;;  %v4696_v14 = vld [vmem:[#allocation30_spill] sm:$0xff] }
 0x43c   :  { %1672 = vmatpush1.msra.mxu0 %v3595_v39  ;;  %1743 = vmatpush1.msra.mxu1 %v4021_v63  ;;  %v4697_v39 = vld [vmem:[#allocation41_spill] sm:$0xff] }
 0x43d   :  { %1673 = vmatprep.subr.mxu0 %v3601_v41  ;;  %1744 = vmatprep.subr.mxu1 %v4027_v40  ;;  %v4698_v41 = vld [vmem:[#allocation31_spill] sm:$0xff] }
 0x43e   :  { %1674 = vmatpush1.msra.mxu0 %v3607_v16  ;;  %1745 = vmatpush1.msra.mxu1 %v4033_v21  ;;  %v4699_v16 = vld [vmem:[#allocation42_spill] sm:$0xff] }
 0x43f   :  { %1675 = vmatprep.subr.mxu0 %v3613_v18  ;;  %1746 = vmatprep.subr.mxu1 %v3801_v25  ;;  %v4700_v18 = vld [vmem:[#allocation32_spill] sm:$0xff] }
 0x440   :  { %1676 = vmatpush1.msra.mxu0 %v3619_v43  ;;  %1747 = vmatpush1.msra.mxu1 %v3807_v62  ;;  %v4701_v43 = vld [vmem:[#allocation43_spill] sm:$0xff] }
 0x441   :  { %1677 = vmatprep.subr.mxu0 %v3625_v45  ;;  %1748 = vmatprep.subr.mxu1 %v3813_v1  ;;  %v4702_v45 = vld [vmem:[#allocation33_spill] sm:$0xff] }
 0x442   :  { %1678 = vmatpush1.msra.mxu0 %v3631_v20  ;;  %1749 = vmatpush1.msra.mxu1 %v3819_v27  ;;  %v4703_v20 = vld [vmem:[#allocation44_spill] sm:$0xff] }
 0x443   :  { %1679 = vmatprep.subr.mxu0 %v3637_v22  ;;  %1750 = vmatprep.subr.mxu1 %v3825_v29  ;;  %v4704_v22 = vld [vmem:[#allocation34_spill] sm:$0xff] }
 0x444   :  { %1680 = vmatpush1.msra.mxu0 %v3642_v47  ;;  %1751 = vmatpush1.msra.mxu1 %v3830_v0  ;;  %v4705_v47 = vld [vmem:[#allocation45_spill] sm:$0xff] }
 0x445   :  { %1681 = vmatprep.subr.mxu0 %v3647_v49  ;;  %1752 = vmatprep.subr.mxu1 %v3835_v2  ;;  %v4706_v49 = vld [vmem:[#allocation35_spill] sm:$0xff] }
 0x446   :  { %1682 = vmatpush1.msra.mxu0 %v3653_v24  ;;  %1753 = vmatpush1.msra.mxu1 %v3841_v31  ;;  %v4707_v24 = vmov 0.0  }
 0x447   :  { %1683 = vmatprep.subr.mxu0 %v3659_v26  ;;  %1754 = vmatprep.subr.mxu1 %v3847_v33  ;;  %v4708_v26 = vld [vmem:[#allocation46_spill] sm:$0xff] }
 0x448   :  { %1684 = vmatpush1.msra.mxu0 %v3665_v51  ;;  %1755 = vmatpush1.msra.mxu1 %v3853_v13  ;;  %v4709_v51 = vld [vmem:[#allocation47_spill] sm:$0xff] }
 0x449   :  { %1685 = vmatprep.subr.mxu0 %v3671_v53  ;;  %1756 = vmatprep.subr.mxu1 %v3859_v42 }
 0x44a   :  { %1686 = vmatpush1.msra.mxu0 %v3677_v28  ;;  %1757 = vmatpush1.msra.mxu1 %v3865_v34  ;;  %v4710_v28 = vld [vmem:[#allocation8_spill] sm:$0xff] }
 0x44b   :  { %1687 = vmatprep.subr.mxu0 %v3683_v30  ;;  %1758 = vmatprep.subr.mxu1 %v4677_v11 }
 0x44c   :  { %1688 = vmatpush1.msra.mxu0 %v3689_v17  ;;  %1759 = vmatpush1.msra.mxu1 %v4691_v9 }
 0x44d   :  { %1689 = vmatprep.subr.mxu0 %v4692_v35  ;;  %1760 = vmatprep.subr.mxu1 %v4693_v23 }
 0x44e   :  { %1690 = vmatpush1.msra.mxu0 %v4694_v37  ;;  %1761 = vmatpush1.msra.mxu1 %v4695_v12 }
 0x44f   :  { %1691 = vmatprep.subr.mxu0 %v4696_v14  ;;  %1762 = vmatprep.subr.mxu1 %v4697_v39 }
 0x450   :  { %1692 = vmatpush1.msra.mxu0 %v4698_v41  ;;  %1763 = vmatpush1.msra.mxu1 %v4699_v16 }
 0x451   :  { %1693 = vmatprep.subr.mxu0 %v4700_v18  ;;  %1764 = vmatprep.subr.mxu1 %v4701_v43 }
 0x452   :  { %1694 = vmatpush1.msra.mxu0 %v4702_v45  ;;  %1765 = vmatpush1.msra.mxu1 %v4703_v20 }
 0x453   :  { %1695 = vmatprep.subr.mxu0 %v4704_v22  ;;  %1766 = vmatprep.subr.mxu1 %v4705_v47 }
 0x454   :  { %1696 = vmatpush1.msra.mxu0 %v4706_v49  ;;  %1729 = vmatprep.mubr.f32.mxu0 %v4707_v24 }
 0x455   :  { %1767 = vmatpush1.msra.mxu1 %v4708_v26  ;;  %1800 = vmatprep.mubr.f32.mxu1 %v4707_v24 }
 0x456   :  { %1979 = vmatprep.subr.mxu1 %v4709_v51 }
 0x4f5   :  { %v1488_v53 = vpop.f32.mrf.mxu0  ;;  %v1559_v3 = vpop.f32.mrf.mxu1 }
 0x4f6   :  { %v1564_v30 = vadd.f32 %v1488_v53, %v4710_v28  ;;  %v1566_v58 = vadd.f32 %v1559_v3, %v4713_v8  ;;  %v4327_v28 = vld [vmem:[%s4590_s2 + $0x68] sm:$0xff] }
 0x4f7   :  { %v1490_v17 = vpop.f32.mrf.mxu0  ;;  %v1561_v46 = vpop.f32.mrf.mxu1  ;;  %v4363_v3 = vld [vmem:[%s4590_s2 + $0x8] sm:$0xff] }
 0x4f8   :  { %v2485_v60 = vmul.f32 -1.442695, %v1564_v30  ;;  %v1565_v6 = vadd.f32 %v1490_v17, %v4711_v57  ;;  %v1567_v15 = vadd.f32 %v1561_v46, %v4712_v19  ;;  %v4333_v30 = vld [vmem:[%s4590_s2 + $0x60] sm:$0xff]  ;;  %v4339_v17 = vld [vmem:[%s4590_s2 + $0x48] sm:$0xff] }
 0x4f9   :  { %v4351_v57 = vld [vmem:[%s4590_s2 + $0x28] sm:$0xff]  ;;  %v4714_v19 = vld [vmem:[#allocation10_spill] sm:$0xff] }
 0x4fa   :  { %2631 = vpow2.f32 %v2485_v60  ;;  %v2486_v56 = vmul.f32 -1.442695, %v1565_v6  ;;  %v2487_v4 = vmul.f32 -1.442695, %v1567_v15  ;;  %v4345_v60 = vld [vmem:[%s4590_s2 + $0x40] sm:$0xff] }
 0x4fb   :  { %v4357_v6 = vld [vmem:[%s4590_s2 + $0x20] sm:$0xff] }
 0x4fc   :  { %2633 = vpow2.f32 %v2486_v56  ;;  %v4369_v56 = vld [vmem:[%s4590_s2] sm:$0xff] }
 0x4fd   :  { %2635 = vtanh.f32 %v1566_v58 }
 0x4fe   :  { %2637 = vpow2.f32 %v2487_v4  ;;  %v4715_v4 = vld [vmem:[#allocation11_spill] sm:$0xff] }
 0x507   :  { %v2632_v61 = vpop.eup %2631 }
 0x508   :  { %v1571_v59 = vadd.f32 1.0, %v2632_v61 }
 0x509   :  { %v2634_v52 = vpop.eup %2633 }
 0x50a   :  { %2639 = vrcp.f32 %v1571_v59  ;;  %v1577_v55 = vadd.f32 1.0, %v2634_v52  ;;  %v2636_v32 = vpop.eup %2635 }
 0x50b   :  { %v2638_v36 = vpop.eup %2637 }
 0x50c   :  { %2641 = vrcp.f32 %v1577_v55  ;;  %v1584_v41 = vadd.f32 1.0, %v2638_v36 }
 0x50e   :  { %2643 = vrcp.f32 %v1584_v41 }
 0x517   :  { %v2640_v35 = vpop.eup %2639 }
 0x518   :  { %v1589_v37 = vmul.f32 %v2640_v35, %v2636_v32  ;;  %v4716_v32 = vld [vmem:[#allocation22_spill] sm:$0xff]  ;;  %v4717_v35 = vld [vmem:[#allocation21_spill] sm:$0xff] }
 0x519   :  { %v2642_v14 = vpop.eup %2641 }
 0x51a   :  { %v1588_v18 = vmul.f32 %v2642_v14, %v4064_v54  ;;  %v4263_v54 = vld [vmem:[%s4590_s2 + $0x120] sm:$0xff] }
 0x51b   :  { %v2644_v22 = vpop.eup %2643 }
 0x51c   :  { %v4141_v45 = vadd.f32 %v1589_v37, %v1588_v18 }
 0x51e   :  { %2645 = vtanh.f32 %v4141_v45 }
 0x52b   :  { %v2646_v49 = vpop.eup %2645 }
 0x52c   :  { %v4144_v53 = vmul.f32 %v2646_v49, %v2644_v22 }
 0x52e   :  { %1730 = vmatmul.mubr.f32.vlgmr.msra.gmra.mxu0 %v4144_v53  ;;  %1801 = vmatmul.mubr.f32.vlgmr.msra.gmra.mxu1 %v4144_v53 }
 0x52f   :  { %1980 = vmatpush1.msra.mxu1 %v3985_v10  ;;  %1972 = vmatprep.mubr.f32.mxu0 %v4707_v24 }
 0x530   :  { %1981 = vmatprep.subr.mxu1 %v3991_v44  ;;  %2043 = vmatprep.mubr.f32.mxu1 %v4707_v24 }
 0x531   :  { %1982 = vmatpush1.msra.mxu1 %v3997_v7 }
 0x532   :  { %1983 = vmatprep.subr.mxu1 %v4003_v38 }
 0x533   :  { %1984 = vmatpush1.msra.mxu1 %v4009_v50 }
 0x534   :  { %1985 = vmatprep.subr.mxu1 %v4015_v5 }
 0x535   :  { %1986 = vmatpush1.msra.mxu1 %v4021_v63 }
 0x536   :  { %1987 = vmatprep.subr.mxu1 %v4027_v40 }
 0x537   :  { %1988 = vmatpush1.msra.mxu1 %v4033_v21 }
 0x538   :  { %1989 = vmatprep.subr.mxu1 %v3801_v25  ;;  %v4185_v25 = vld [vmem:[%s4590_s2 + $0x1e8] sm:$0xff] }
 0x539   :  { %1990 = vmatpush1.msra.mxu1 %v3807_v62  ;;  %1908 = vmatprep.subr.mxu0 %v4185_v25  ;;  %v4191_v62 = vld [vmem:[%s4590_s2 + $0x1e0] sm:$0xff] }
 0x53a   :  { %1991 = vmatprep.subr.mxu1 %v3813_v1  ;;  %1909 = vmatpush1.msra.mxu0 %v4191_v62  ;;  %v4197_v1 = vld [vmem:[%s4590_s2 + $0x1c8] sm:$0xff] }
 0x53b   :  { %1992 = vmatpush1.msra.mxu1 %v3819_v27  ;;  %1910 = vmatprep.subr.mxu0 %v4197_v1  ;;  %v4203_v27 = vld [vmem:[%s4590_s2 + $0x1c0] sm:$0xff] }
 0x53c   :  { %1993 = vmatprep.subr.mxu1 %v3825_v29  ;;  %1911 = vmatpush1.msra.mxu0 %v4203_v27  ;;  %v4209_v29 = vld [vmem:[%s4590_s2 + $0x1a8] sm:$0xff] }
 0x53d   :  { %1994 = vmatpush1.msra.mxu1 %v3830_v0  ;;  %1912 = vmatprep.subr.mxu0 %v4209_v29  ;;  %v4215_v0 = vld [vmem:[%s4590_s2 + $0x1a0] sm:$0xff] }
 0x53e   :  { %1995 = vmatprep.subr.mxu1 %v3835_v2  ;;  %1913 = vmatpush1.msra.mxu0 %v4215_v0  ;;  %v4221_v2 = vld [vmem:[%s4590_s2 + $0x188] sm:$0xff] }
 0x53f   :  { %1996 = vmatpush1.msra.mxu1 %v3841_v31  ;;  %1914 = vmatprep.subr.mxu0 %v4221_v2  ;;  %v4227_v31 = vld [vmem:[%s4590_s2 + $0x180] sm:$0xff] }
 0x540   :  { %1997 = vmatprep.subr.mxu1 %v3847_v33  ;;  %1915 = vmatpush1.msra.mxu0 %v4227_v31  ;;  %v4233_v33 = vld [vmem:[%s4590_s2 + $0x168] sm:$0xff] }
 0x541   :  { %1998 = vmatpush1.msra.mxu1 %v3853_v13  ;;  %1916 = vmatprep.subr.mxu0 %v4233_v33  ;;  %v4239_v13 = vld [vmem:[%s4590_s2 + $0x160] sm:$0xff] }
 0x542   :  { %1999 = vmatprep.subr.mxu1 %v3859_v42  ;;  %1917 = vmatpush1.msra.mxu0 %v4239_v13  ;;  %v4245_v42 = vld [vmem:[%s4590_s2 + $0x148] sm:$0xff] }
 0x543   :  { %2000 = vmatpush1.msra.mxu1 %v3865_v34  ;;  %1918 = vmatprep.subr.mxu0 %v4245_v42  ;;  %v4251_v34 = vld [vmem:[%s4590_s2 + $0x140] sm:$0xff] }
 0x544   :  { %2001 = vmatprep.subr.mxu1 %v4677_v11  ;;  %1919 = vmatpush1.msra.mxu0 %v4251_v34  ;;  %v4257_v11 = vld [vmem:[%s4590_s2 + $0x128] sm:$0xff] }
 0x545   :  { %2002 = vmatpush1.msra.mxu1 %v4691_v9  ;;  %1920 = vmatprep.subr.mxu0 %v4257_v11  ;;  %v4269_v9 = vld [vmem:[%s4590_s2 + $0x108] sm:$0xff] }
 0x546   :  { %2003 = vmatprep.subr.mxu1 %v4693_v23  ;;  %1921 = vmatpush1.msra.mxu0 %v4263_v54  ;;  %v4274_v23 = vld [vmem:[%s4590_s2 + $0x100] sm:$0xff] }
 0x547   :  { %2004 = vmatpush1.msra.mxu1 %v4695_v12  ;;  %v4279_v12 = vld [vmem:[%s4590_s2 + $0xe8] sm:$0xff]  ;;  %1922 = vmatprep.subr.mxu0 %v4269_v9 }
 0x548   :  { %2005 = vmatprep.subr.mxu1 %v4697_v39  ;;  %v4285_v39 = vld [vmem:[%s4590_s2 + $0xe0] sm:$0xff]  ;;  %1923 = vmatpush1.msra.mxu0 %v4274_v23 }
 0x549   :  { %2006 = vmatpush1.msra.mxu1 %v4699_v16  ;;  %v4291_v16 = vld [vmem:[%s4590_s2 + $0xc8] sm:$0xff]  ;;  %1924 = vmatprep.subr.mxu0 %v4279_v12 }
 0x54a   :  { %2007 = vmatprep.subr.mxu1 %v4701_v43  ;;  %v4297_v43 = vld [vmem:[%s4590_s2 + $0xc0] sm:$0xff]  ;;  %1925 = vmatpush1.msra.mxu0 %v4285_v39 }
 0x54b   :  { %2008 = vmatpush1.msra.mxu1 %v4703_v20  ;;  %v4303_v20 = vld [vmem:[%s4590_s2 + $0xa8] sm:$0xff]  ;;  %1926 = vmatprep.subr.mxu0 %v4291_v16 }
 0x54c   :  { %2009 = vmatprep.subr.mxu1 %v4705_v47  ;;  %v4309_v47 = vld [vmem:[%s4590_s2 + $0xa0] sm:$0xff]  ;;  %1927 = vmatpush1.msra.mxu0 %v4297_v43 }
 0x54d   :  { %2010 = vmatpush1.msra.mxu1 %v4708_v26  ;;  %v4315_v26 = vld [vmem:[%s4590_s2 + $0x88] sm:$0xff]  ;;  %1928 = vmatprep.subr.mxu0 %v4303_v20 }
 0x54e   :  { %2222 = vmatprep.subr.mxu1 %v4709_v51  ;;  %v4321_v51 = vld [vmem:[%s4590_s2 + $0x80] sm:$0xff]  ;;  %1929 = vmatpush1.msra.mxu0 %v4309_v47 }
 0x54f   :  { %1930 = vmatprep.subr.mxu0 %v4315_v26 }
 0x550   :  { %1931 = vmatpush1.msra.mxu0 %v4321_v51 }
 0x551   :  { %1932 = vmatprep.subr.mxu0 %v4327_v28 }
 0x552   :  { %1933 = vmatpush1.msra.mxu0 %v4333_v30 }
 0x553   :  { %1934 = vmatprep.subr.mxu0 %v4339_v17 }
 0x554   :  { %1935 = vmatpush1.msra.mxu0 %v4345_v60 }
 0x555   :  { %1936 = vmatprep.subr.mxu0 %v4351_v57 }
 0x556   :  { %1937 = vmatpush1.msra.mxu0 %v4357_v6 }
 0x557   :  { %1938 = vmatprep.subr.mxu0 %v4363_v3 }
 0x558   :  { %1939 = vmatpush1.msra.mxu0 %v4369_v56 }
 0x559   :  { %2151 = vmatprep.subr.mxu0 %v4185_v25 }
 0x5ee   :  { %v1731_v46 = vpop.f32.mrf.mxu0  ;;  %v1802_v59 = vpop.f32.mrf.mxu1 }
 0x5ef   :  { %v1807_v15 = vadd.f32 %v1731_v46, %v4714_v19  ;;  %v1809_v37 = vadd.f32 %v1802_v59, %v4717_v35 }
 0x5f0   :  { %v1733_v8 = vpop.f32.mrf.mxu0  ;;  %v1804_v55 = vpop.f32.mrf.mxu1 }
 0x5f1   :  { %v2488_v58 = vmul.f32 -1.442695, %v1807_v15  ;;  %v1808_v61 = vadd.f32 %v1733_v8, %v4715_v4  ;;  %v1810_v36 = vadd.f32 %v1804_v55, %v4716_v32 }
 0x5f3   :  { %2647 = vpow2.f32 %v2488_v58  ;;  %v2489_v52 = vmul.f32 -1.442695, %v1808_v61  ;;  %v2490_v14 = vmul.f32 -1.442695, %v1810_v36 }
 0x5f5   :  { %2649 = vpow2.f32 %v2489_v52 }
 0x5f6   :  { %2651 = vtanh.f32 %v1809_v37 }
 0x5f7   :  { %2653 = vpow2.f32 %v2490_v14 }
 0x600   :  { %v2648_v41 = vpop.eup %2647 }
 0x601   :  { %v1814_v18 = vadd.f32 1.0, %v2648_v41 }
 0x602   :  { %v2650_v22 = vpop.eup %2649 }
 0x603   :  { %2655 = vrcp.f32 %v1814_v18  ;;  %v1820_v49 = vadd.f32 1.0, %v2650_v22  ;;  %v2652_v25 = vpop.eup %2651 }
 0x604   :  { %v2654_v46 = vpop.eup %2653 }
 0x605   :  { %2657 = vrcp.f32 %v1820_v49  ;;  %v1827_v58 = vadd.f32 1.0, %v2654_v46 }
 0x607   :  { %2659 = vrcp.f32 %v1827_v58  ;;  %v2345_v58 = vld [vmem:[%s4593_s4 + $0x60] sm:$0xff] }
 0x610   :  { %v2656_v19 = vpop.eup %2655 }
 0x611   :  { %v1832_v15 = vmul.f32 %v2656_v19, %v2652_v25  ;;  %v2347_v19 = vld [vmem:[%s4593_s4 + $0x70] sm:$0xff] }
 0x612   :  { %v2658_v8 = vpop.eup %2657 }
 0x613   :  { %v1831_v4 = vmul.f32 %v2658_v8, %v4141_v45  ;;  %v2110_v45 = vld [vmem:[%s4590_s2 + $0xb8] sm:$0xff]  ;;  %v2346_v8 = vld [vmem:[%s4593_s4 + $0x68] sm:$0xff] }
 0x614   :  { %v2660_v59 = vpop.eup %2659 }
 0x615   :  { %v4380_v61 = vadd.f32 %v1832_v15, %v1831_v4  ;;  %v4722_v15 = vld [vmem:[#allocation27_spill] sm:$0xff]  ;;  %v2344_v4 = vld [vmem:[%s4593_s4 + $0x58] sm:$0xff] }
 0x617   :  { %2661 = vtanh.f32 %v4380_v61 }
 0x624   :  { %v2662_v52 = vpop.eup %2661 }
 0x625   :  { %v4383_v55 = vmul.f32 %v2662_v52, %v2660_v59  ;;  %v2342_v59 = vld [vmem:[%s4593_s4 + $0x48] sm:$0xff]  ;;  %v2341_v52 = vld [vmem:[%s4593_s4 + $0x40] sm:$0xff] }
 0x627   :  { %1973 = vmatmul.mubr.f32.vlgmr.msra.gmra.mxu0 %v4383_v55  ;;  %2044 = vmatmul.mubr.f32.vlgmr.msra.gmra.mxu1 %v4383_v55 }
 0x628   :  { %2152 = vmatpush1.msra.mxu0 %v4191_v62  ;;  %2223 = vmatpush1.msra.mxu1 %v3985_v10  ;;  %v2130_v10 = vld [vmem:[%s4590_s2 + $0x158] sm:$0xff]  ;;  %v2109_v62 = vld [vmem:[%s4590_s2 + $0xb0] sm:$0xff] }
 0x629   :  { %2153 = vmatprep.subr.mxu0 %v4197_v1  ;;  %2224 = vmatprep.subr.mxu1 %v3991_v44  ;;  %v2129_v44 = vld [vmem:[%s4590_s2 + $0x150] sm:$0xff]  ;;  %v2106_v1 = vld [vmem:[%s4590_s2 + $0x98] sm:$0xff] }
 0x62a   :  { %2154 = vmatpush1.msra.mxu0 %v4203_v27  ;;  %2225 = vmatpush1.msra.mxu1 %v3997_v7  ;;  %v2126_v7 = vld [vmem:[%s4590_s2 + $0x138] sm:$0xff] }
 0x62b   :  { %2155 = vmatprep.subr.mxu0 %v4209_v29  ;;  %2226 = vmatprep.subr.mxu1 %v4003_v38  ;;  %v2125_v38 = vld [vmem:[%s4590_s2 + $0x130] sm:$0xff]  ;;  %v2348_v27 = vld [vmem:[%s4593_s4 + $0x78] sm:$0xff] }
 0x62c   :  { %2156 = vmatpush1.msra.mxu0 %v4215_v0  ;;  %2227 = vmatpush1.msra.mxu1 %v4009_v50  ;;  %v2122_v50 = vld [vmem:[%s4590_s2 + $0x118] sm:$0xff]  ;;  %v2105_v29 = vld [vmem:[%s4590_s2 + $0x90] sm:$0xff] }
 0x62d   :  { %2157 = vmatprep.subr.mxu0 %v4221_v2  ;;  %2228 = vmatprep.subr.mxu1 %v4015_v5  ;;  %v2121_v5 = vld [vmem:[%s4590_s2 + $0x110] sm:$0xff]  ;;  %v2102_v0 = vld [vmem:[%s4590_s2 + $0x78] sm:$0xff] }
 0x62e   :  { %2158 = vmatpush1.msra.mxu0 %v4227_v31  ;;  %2229 = vmatpush1.msra.mxu1 %v4021_v63  ;;  %v2118_v63 = vld [vmem:[%s4590_s2 + $0xf8] sm:$0xff]  ;;  %v2101_v2 = vld [vmem:[%s4590_s2 + $0x70] sm:$0xff] }
 0x62f   :  { %2159 = vmatprep.subr.mxu0 %v4233_v33  ;;  %2230 = vmatprep.subr.mxu1 %v4027_v40  ;;  %v2117_v40 = vld [vmem:[%s4590_s2 + $0xf0] sm:$0xff]  ;;  %v2098_v31 = vld [vmem:[%s4590_s2 + $0x58] sm:$0xff] }
 0x630   :  { %2160 = vmatpush1.msra.mxu0 %v4239_v13  ;;  %2231 = vmatpush1.msra.mxu1 %v4033_v21  ;;  %v2114_v21 = vld [vmem:[%s4590_s2 + $0xd8] sm:$0xff]  ;;  %v2097_v33 = vld [vmem:[%s4590_s2 + $0x50] sm:$0xff] }
 0x631   :  { %2161 = vmatprep.subr.mxu0 %v4245_v42  ;;  %2215 = vmatprep.mubr.f32.mxu0 %v4707_v24  ;;  %v2094_v13 = vld [vmem:[%s4590_s2 + $0x38] sm:$0xff]  ;;  %v2093_v42 = vld [vmem:[%s4590_s2 + $0x30] sm:$0xff] }
 0x632   :  { %2162 = vmatpush1.msra.mxu0 %v4251_v34  ;;  %2286 = vmatprep.mubr.f32.mxu1 %v4707_v24  ;;  %v2113_v24 = vld [vmem:[%s4590_s2 + $0xd0] sm:$0xff]  ;;  %v2090_v34 = vld [vmem:[%s4590_s2 + $0x18] sm:$0xff] }
 0x633   :  { %2163 = vmatprep.subr.mxu0 %v4257_v11  ;;  %2232 = vmatprep.subr.mxu1 %v2130_v10  ;;  %v2089_v11 = vld [vmem:[%s4590_s2 + $0x10] sm:$0xff]  ;;  %v2340_v10 = vld [vmem:[%s4593_s4 + $0x38] sm:$0xff] }
 0x634   :  { %2164 = vmatpush1.msra.mxu0 %v4263_v54  ;;  %2233 = vmatpush1.msra.mxu1 %v2129_v44  ;;  %v2339_v44 = vld [vmem:[%s4593_s4 + $0x30] sm:$0xff] }
 0x635   :  { %2165 = vmatprep.subr.mxu0 %v4269_v9  ;;  %2234 = vmatprep.subr.mxu1 %v2126_v7  ;;  %v4718_v9 = vld [vmem:[#allocation12_spill] sm:$0xff]  ;;  %v2338_v7 = vld [vmem:[%s4593_s4 + $0x28] sm:$0xff] }
 0x636   :  { %2166 = vmatpush1.msra.mxu0 %v4274_v23  ;;  %2235 = vmatpush1.msra.mxu1 %v2125_v38  ;;  %v2337_v38 = vld [vmem:[%s4593_s4 + $0x20] sm:$0xff] }
 0x637   :  { %2167 = vmatprep.subr.mxu0 %v4279_v12  ;;  %2236 = vmatprep.subr.mxu1 %v2122_v50  ;;  %v2336_v50 = vld [vmem:[%s4593_s4 + $0x18] sm:$0xff] }
 0x638   :  { %2168 = vmatpush1.msra.mxu0 %v4285_v39  ;;  %2237 = vmatpush1.msra.mxu1 %v2121_v5  ;;  %v2335_v5 = vld [vmem:[%s4593_s4 + $0x10] sm:$0xff] }
 0x639   :  { %2169 = vmatprep.subr.mxu0 %v4291_v16  ;;  %2238 = vmatprep.subr.mxu1 %v2118_v63  ;;  %v4719_v16 = vld [vmem:[#allocation13_spill] sm:$0xff]  ;;  %v2334_v63 = vld [vmem:[%s4593_s4 + $0x8] sm:$0xff] }
 0x63a   :  { %2170 = vmatpush1.msra.mxu0 %v4297_v43  ;;  %2239 = vmatpush1.msra.mxu1 %v2117_v40  ;;  %v2333_v40 = vld [vmem:[%s4593_s4] sm:$0xff] }
 0x63b   :  { %2171 = vmatprep.subr.mxu0 %v4303_v20  ;;  %2240 = vmatprep.subr.mxu1 %v2114_v21  ;;  %v4723_v21 = vld [vmem:[#allocation36_spill] sm:$0xff] }
 0x63c   :  { %2172 = vmatpush1.msra.mxu0 %v4309_v47  ;;  %2241 = vmatpush1.msra.mxu1 %v2113_v24  ;;  %v4724_v24 = vld [vmem:[#allocation16_spill] sm:$0xff] }
 0x63d   :  { %2173 = vmatprep.subr.mxu0 %v4315_v26  ;;  %2242 = vmatprep.subr.mxu1 %v2110_v45 }
 0x63e   :  { %2174 = vmatpush1.msra.mxu0 %v4321_v51  ;;  %2243 = vmatpush1.msra.mxu1 %v2109_v62  ;;  %v4720_v51 = vld [vmem:[#allocation24_spill] sm:$0xff]  ;;  %v4725_v62 = vld [vmem:[#allocation14_spill] sm:$0xff] }
 0x63f   :  { %2175 = vmatprep.subr.mxu0 %v4327_v28  ;;  %2244 = vmatprep.subr.mxu1 %v2106_v1 }
 0x640   :  { %2176 = vmatpush1.msra.mxu0 %v4333_v30  ;;  %2245 = vmatpush1.msra.mxu1 %v2105_v29  ;;  %v4721_v30 = vld [vmem:[#allocation23_spill] sm:$0xff] }
 0x641   :  { %2177 = vmatprep.subr.mxu0 %v4339_v17  ;;  %2246 = vmatprep.subr.mxu1 %v2102_v0  ;;  %v4726_v0 = vld [vmem:[#allocation15_spill] sm:$0xff] }
 0x642   :  { %2178 = vmatpush1.msra.mxu0 %v4345_v60  ;;  %2247 = vmatpush1.msra.mxu1 %v2101_v2 }
 0x643   :  { %2179 = vmatprep.subr.mxu0 %v4351_v57  ;;  %2248 = vmatprep.subr.mxu1 %v2098_v31 }
 0x644   :  { %2180 = vmatpush1.msra.mxu0 %v4357_v6  ;;  %2249 = vmatpush1.msra.mxu1 %v2097_v33 }
 0x645   :  { %2181 = vmatprep.subr.mxu0 %v4363_v3  ;;  %2250 = vmatprep.subr.mxu1 %v2094_v13 }
 0x646   :  { %2182 = vmatpush1.msra.mxu0 %v4369_v56  ;;  %2251 = vmatpush1.msra.mxu1 %v2093_v42  ;;  %v4727_v42 = vld [vmem:[#allocation26_spill] sm:$0xff] }
 0x647   :  { %2522 = vmatprep.subr.mxu0 %v2348_v27  ;;  %2252 = vmatprep.subr.mxu1 %v2090_v34 }
 0x648   :  { %2253 = vmatpush1.msra.mxu1 %v2089_v11 }
 0x6e7   :  { %v1974_v54 = vpop.f32.mrf.mxu0  ;;  %v2045_v20 = vpop.f32.mrf.mxu1 }
 0x6e8   :  { %v2050_v23 = vadd.f32 %v1974_v54, %v4718_v9  ;;  %v2052_v17 = vadd.f32 %v2045_v20, %v4721_v30 }
 0x6e9   :  { %v1976_v12 = vpop.f32.mrf.mxu0  ;;  %v2047_v26 = vpop.f32.mrf.mxu1 }
 0x6ea   :  { %v2491_v39 = vmul.f32 -1.442695, %v2050_v23  ;;  %v2051_v43 = vadd.f32 %v1976_v12, %v4719_v16  ;;  %v2053_v28 = vadd.f32 %v2047_v26, %v4720_v51  ;;  %v2497_v12 = vld [vmem:[%s4594_s5] ss:$0 sm:$0xff] }
 0x6ec   :  { %2663 = vpow2.f32 %v2491_v39  ;;  %v2492_v47 = vmul.f32 -1.442695, %v2051_v43  ;;  %v2493_v60 = vmul.f32 -1.442695, %v2053_v28 }
 0x6ee   :  { %2665 = vpow2.f32 %v2492_v47 }
 0x6ef   :  { %2667 = vtanh.f32 %v2052_v17 }
 0x6f0   :  { %2669 = vpow2.f32 %v2493_v60 }
 0x6f9   :  { %v2664_v57 = vpop.eup %2663 }
 0x6fa   :  { %v2057_v6 = vadd.f32 1.0, %v2664_v57 }
 0x6fb   :  { %v2666_v3 = vpop.eup %2665 }
 0x6fc   :  { %2671 = vrcp.f32 %v2057_v6  ;;  %v2063_v56 = vadd.f32 1.0, %v2666_v3  ;;  %v2668_v32 = vpop.eup %2667 }
 0x6fd   :  { %v2670_v36 = vpop.eup %2669 }
 0x6fe   :  { %2673 = vrcp.f32 %v2063_v56  ;;  %v2070_v41 = vadd.f32 1.0, %v2670_v36 }
 0x700   :  { %2675 = vrcp.f32 %v2070_v41 }
 0x709   :  { %v2672_v35 = vpop.eup %2671 }
 0x70a   :  { %v2075_v37 = vmul.f32 %v2672_v35, %v2668_v32 }
 0x70b   :  { %v2674_v14 = vpop.eup %2673 }
 0x70c   :  { %v2074_v18 = vmul.f32 %v2674_v14, %v4380_v61  ;;  %v2343_v61 = vld [vmem:[%s4593_s4 + $0x50] sm:$0xff] }
 0x70d   :  { %v2676_v49 = vpop.eup %2675 }
 0x70e   :  { %v4503_v22 = vadd.f32 %v2075_v37, %v2074_v18 }
 0x710   :  { %2677 = vtanh.f32 %v4503_v22 }
 0x71d   :  { %v2678_v25 = vpop.eup %2677 }
 0x71e   :  { %v2078_v46 = vmul.f32 %v2678_v25, %v2676_v49 }
 0x720   :  { %2216 = vmatmul.mubr.f32.vlgmr.msra.gmra.mxu0 %v2078_v46  ;;  %2287 = vmatmul.mubr.f32.vlgmr.msra.gmra.mxu1 %v2078_v46 }
 0x721   :  { %2523 = vmatpush3.msra.mxu0 %v2348_v27  ;;  %2554 = vmatprep.mubr.f32.mxu0 %v4722_v15 }
 0x722   :  { %2524 = vmatprep.subr.mxu0 %v2347_v19 }
 0x723   :  { %2525 = vmatpush3.msra.mxu0 %v2347_v19 }
 0x724   :  { %2526 = vmatprep.subr.mxu0 %v2346_v8 }
 0x725   :  { %2527 = vmatpush3.msra.mxu0 %v2346_v8 }
 0x726   :  { %2528 = vmatprep.subr.mxu0 %v2345_v58 }
 0x727   :  { %2529 = vmatpush3.msra.mxu0 %v2345_v58 }
 0x728   :  { %2530 = vmatprep.subr.mxu0 %v2344_v4 }
 0x729   :  { %2531 = vmatpush3.msra.mxu0 %v2344_v4 }
 0x72a   :  { %2532 = vmatprep.subr.mxu0 %v2343_v61 }
 0x72b   :  { %2533 = vmatpush3.msra.mxu0 %v2343_v61 }
 0x72c   :  { %2534 = vmatprep.subr.mxu0 %v2342_v59 }
 0x72d   :  { %2535 = vmatpush3.msra.mxu0 %v2342_v59 }
 0x72e   :  { %2536 = vmatprep.subr.mxu0 %v2341_v52 }
 0x72f   :  { %2537 = vmatpush3.msra.mxu0 %v2341_v52 }
 0x730   :  { %2538 = vmatprep.subr.mxu0 %v2340_v10 }
 0x731   :  { %2539 = vmatpush3.msra.mxu0 %v2340_v10 }
 0x732   :  { %2540 = vmatprep.subr.mxu0 %v2339_v44 }
 0x733   :  { %2541 = vmatpush3.msra.mxu0 %v2339_v44 }
 0x734   :  { %2542 = vmatprep.subr.mxu0 %v2338_v7 }
 0x735   :  { %2543 = vmatpush3.msra.mxu0 %v2338_v7 }
 0x736   :  { %2544 = vmatprep.subr.mxu0 %v2337_v38 }
 0x737   :  { %2545 = vmatpush3.msra.mxu0 %v2337_v38 }
 0x738   :  { %2546 = vmatprep.subr.mxu0 %v2336_v50 }
 0x739   :  { %2547 = vmatpush3.msra.mxu0 %v2336_v50 }
 0x73a   :  { %2548 = vmatprep.subr.mxu0 %v2335_v5 }
 0x73b   :  { %2549 = vmatpush3.msra.mxu0 %v2335_v5 }
 0x73c   :  { %2550 = vmatprep.subr.mxu0 %v2334_v63 }
 0x73d   :  { %2551 = vmatpush3.msra.mxu0 %v2334_v63 }
 0x73e   :  { %2552 = vmatprep.subr.mxu0 %v2333_v40 }
 0x73f   :  { %2553 = vmatpush3.msra.mxu0 %v2333_v40 }
 0x740   :  { %2555 = vmatmul.mubr.f32.vlgmr.msra.gmra.mxu0 %v4723_v21 }
 0x741   :  { %2557 = vmatprep.mubr.f32.mxu0 %v4724_v24 }
 0x744   :  { %2558 = vmatmul.mubr.f32.gmra.mxu0 %v4067_v48  ;;  %v4728_v48 = vld [vmem:[#allocation25_spill] sm:$0xff] }
 0x745   :  { %2560 = vmatprep.mubr.f32.mxu0 %v4144_v53 }
 0x748   :  { %2561 = vmatmul.mubr.f32.gmra.mxu0 %v4383_v55 }
 0x749   :  { %2563 = vmatprep.mubr.f32.mxu0 %v2078_v46 }
 0x7e0   :  { %v2217_v45 = vpop.f32.mrf.mxu0  ;;  %v2288_v31 = vpop.f32.mrf.mxu1 }
 0x7e1   :  { %v2293_v1 = vadd.f32 %v2217_v45, %v4725_v62  ;;  %v2295_v11 = vadd.f32 %v2288_v31, %v4728_v48 }
 0x7e2   :  { %v2219_v27 = vpop.f32.mrf.mxu0  ;;  %v2290_v13 = vpop.f32.mrf.mxu1 }
 0x7e3   :  { %v2494_v29 = vmul.f32 -1.442695, %v2293_v1  ;;  %v2294_v2 = vadd.f32 %v2219_v27, %v4726_v0  ;;  %v2296_v34 = vadd.f32 %v2290_v13, %v4727_v42 }
 0x7e5   :  { %2679 = vpow2.f32 %v2494_v29  ;;  %v2495_v33 = vmul.f32 -1.442695, %v2294_v2  ;;  %v2496_v53 = vmul.f32 -1.442695, %v2296_v34 }
 0x7e7   :  { %2681 = vpow2.f32 %v2495_v33 }
 0x7e8   :  { %2683 = vtanh.f32 %v2295_v11 }
 0x7e9   :  { %2685 = vpow2.f32 %v2496_v53 }
 0x7f2   :  { %v2680_v54 = vpop.eup %2679 }
 0x7f3   :  { %v2300_v55 = vadd.f32 1.0, %v2680_v54 }
 0x7f4   :  { %v2682_v9 = vpop.eup %2681 }
 0x7f5   :  { %2687 = vrcp.f32 %v2300_v55  ;;  %v2306_v23 = vadd.f32 1.0, %v2682_v9  ;;  %v2684_v39 = vpop.eup %2683 }
 0x7f6   :  { %v2686_v43 = vpop.eup %2685 }
 0x7f7   :  { %2689 = vrcp.f32 %v2306_v23  ;;  %v2313_v17 = vadd.f32 1.0, %v2686_v43 }
 0x7f9   :  { %2691 = vrcp.f32 %v2313_v17 }
 0x800   :  { %v2556_v16 = vpop.f32.mrf.mxu0 }
 0x801   :  { %v2428_v20 = vadd.f32 %v2556_v16, %v2497_v12 }
 0x802   :  { %v2688_v47 = vpop.eup %2687  ;;  %v2422_v26 = vpop.f32.mrf.mxu0 }
 0x803   :  { %v2318_v51 = vmul.f32 %v2688_v47, %v2684_v39  ;;  %2462 = vst [vmem:[%s4595_s6 + $0x8] sm:$0xff] %v2428_v20  ;;  %v2423_v28 = vadd.f32 %v2497_v12, %v2422_v26 }
 0x804   :  { %v2690_v30 = vpop.eup %2689  ;;  %v2559_v60 = vpop.f32.mrf.mxu0 }
 0x805   :  { %v2317_v57 = vmul.f32 %v2690_v30, %v4503_v22  ;;  %2461 = vst [vmem:[%s4595_s6] sm:$0xff] %v2423_v28  ;;  %v2438_v6 = vadd.f32 %v2559_v60, %v2497_v12 }
 0x806   :  { %v2432_v3 = vpop.f32.mrf.mxu0  ;;  %v2692_v41 = vpop.eup %2691 }
 0x807   :  { %2464 = vst [vmem:[%s4595_s6 + $0x18] sm:$0xff] %v2438_v6  ;;  %v2433_v56 = vadd.f32 %v2497_v12, %v2432_v3  ;;  %v2319_v32 = vadd.f32 %v2318_v51, %v2317_v57 }
 0x808   :  { %v2562_v36 = vpop.f32.mrf.mxu0 }
 0x809   :  { %2463 = vst [vmem:[%s4595_s6 + $0x10] sm:$0xff] %v2433_v56  ;;  %v2448_v35 = vadd.f32 %v2562_v36, %v2497_v12  ;;  %2693 = vtanh.f32 %v2319_v32 }
 0x80a   :  { %v2442_v37 = vpop.f32.mrf.mxu0 }
 0x80b   :  { %2466 = vst [vmem:[%s4595_s6 + $0x28] sm:$0xff] %v2448_v35  ;;  %v2443_v14 = vadd.f32 %v2497_v12, %v2442_v37 }
 0x80d   :  { %2465 = vst [vmem:[%s4595_s6 + $0x20] sm:$0xff] %v2443_v14 }
 0x816   :  { %v2694_v18 = vpop.eup %2693 }
 0x817   :  { %v2321_v22 = vmul.f32 %v2694_v18, %v2692_v41 }
 0x819   :  { %2564 = vmatmul.mubr.f32.gmra.mxu0 %v2321_v22 }
 0x8d9   :  { %v2565_v49 = vpop.f32.mrf.mxu0 }
 0x8da   :  { %v2458_v25 = vadd.f32 %v2565_v49, %v2497_v12 }
 0x8db   :  { %v2452_v46 = vpop.f32.mrf.mxu0 }
 0x8dc   :  { %2468 = vst [vmem:[%s4595_s6 + $0x38] sm:$0xff] %v2458_v25  ;;  %v2453_v19 = vadd.f32 %v2497_v12, %v2452_v46 }
 0x8de   :  { %2467 = vst [vmem:[%s4595_s6 + $0x30] sm:$0xff] %v2453_v19 }

</bundles_post_ra>
